<compile_context>
chip_gen: v7x
topology: tpu7x:2x2x1
jax: 0.10.0
libtpu: 0.0.40
codegen_flags: <defaults>
</compile_context>

<pallas_src>
import jax
import jax.numpy as jnp
from jax.experimental import pallas as pl
from jax.experimental.pallas import tpu as pltpu

_C0, _C1, _C2, _C3 = 3, 32, 64, 64   # channel sizes fixed by the module spec


def _round_up(v, m):
    return -(-v // m) * m


def _make_kernel(W8, A1B, OH2, OH3, RPI, B_blk):
    """Fused conv+ReLU x3 kernel body for static spatial sizes.

    Row convention (shared by the x input, a1/a2 scratches and the output):
    image n occupies rows [n*RPI, (n+1)*RPI); within an image, spatial block
    (row q, col w) of the current plane sits at row q*W8 + w.  Columns
    w >= valid-width and the inter-image gap rows are garbage M rows.
    """
    M1 = (B_blk - 1) * RPI + A1B * W8    # rows touched by layer-1 output
    M2 = (B_blk - 1) * RPI + OH2 * W8    # rows touched by layer-2 output
    M3 = (B_blk - 1) * RPI + OH3 * W8    # rows touched by layer-3 output
    R = B_blk * RPI                      # scratch / block row count

    def kernel(x_ref, w1_ref, b1_ref, w2_ref, b2_ref, w3_ref, b3_ref,
               o_ref, a1_ref, a2_ref):
        b1 = b1_ref[...]                                # (1, 32)  f32
        b2 = b2_ref[...]                                # (1, 64)  f32
        b3 = b3_ref[...]                                # (1, 64)  f32
        w1s = [w1_ref[t] for t in range(4)]             # 4 x (48, 32) bf16

        # Clear the tail rows the next layer reads as garbage M rows, so every
        # read of the (persistent) scratches is deterministic and never stale.
        a1_ref[pl.ds(M1, R - M1), :] = jnp.zeros((R - M1, 4 * _C1), jnp.bfloat16)
        a2_ref[pl.ds(M2, R - M2), :] = jnp.zeros((R - M2, _C2), jnp.bfloat16)

        # ---- layer 1: 8x8 / stride-4 conv on the 8x8 space-to-depth input --
        # One pass per output-parity class (ri, rj); each pass is 4 whole-plane
        # matmuls (one per 4x4 sub-kernel tap) and writes a 32-lane slice of
        # the 128-wide 2x2-s2d layer-1 activation.
        for ri in range(2):
            for rj in range(2):
                acc = jnp.zeros((M1, _C1), jnp.float32)
                for ai in range(2):
                    for bj in range(2):
                        off = ((ri + ai) // 2) * W8 + ((rj + bj) // 2)
                        gx = 2 * ((ri + ai) % 2) + ((rj + bj) % 2)
                        lhs = x_ref[pl.ds(off, M1), pl.ds(48 * gx, 48)]
                        acc = acc + jnp.dot(
                            lhs, w1s[2 * ai + bj],
                            preferred_element_type=jnp.float32)
                a1_ref[pl.ds(0, M1), pl.ds(_C1 * (2 * ri + rj), _C1)] = (
                    jnp.maximum(acc + b1, 0.0).astype(jnp.bfloat16))

        # ---- layer 2: 4x4 / stride-2 conv == 2x2 / stride-1 on s2d a1 ------
        # 4 whole-plane matmuls with K=128 (4 taps x 32ch grouped into lanes).
        acc = jnp.zeros((M2, _C2), jnp.float32)
        for ci in range(2):
            for cj in range(2):
                lhs = a1_ref[pl.ds(ci * W8 + cj, M2), :]        # (M2, 128)
                acc = acc + jnp.dot(lhs, w2_ref[2 * ci + cj],
                                    preferred_element_type=jnp.float32)
        a2_ref[pl.ds(0, M2), :] = (
            jnp.maximum(acc + b2, 0.0).astype(jnp.bfloat16))

        # ---- layer 3: 3x3 / stride-1 conv: 9 whole-plane matmuls -----------
        acc = jnp.zeros((M3, _C3), jnp.float32)
        for kr in range(3):
            for kc in range(3):
                lhs = a2_ref[pl.ds(kr * W8 + kc, M3), :]        # (M3, 64)
                acc = acc + jnp.dot(lhs, w3_ref[3 * kr + kc],
                                    preferred_element_type=jnp.float32)
        o_ref[pl.ds(0, M3), :] = jnp.maximum(acc + b3, 0.0)     # one block store

    return kernel


def pack_params(params):
    """One-time repack of PyTorch (OC, IC, KH, KW) weights into bf16 slabs."""
    (w1, b1), (w2, b2), (w3, b3) = params
    # layer 1: (32,3,8,8) -> (4, 48, 32); slab t = (ai, bj) 4x4 block of the
    # 8x8 kernel, rows ordered (pi, pj, c) to match the x lane layout.
    w1p = jnp.transpose(w1, (2, 3, 1, 0)).reshape(2, 4, 2, 4, _C0, _C1)
    w1p = jnp.transpose(w1p, (0, 2, 1, 3, 4, 5)).reshape(4, 48, _C1)
    # layer 2: (64,32,4,4) -> (4, 128, 64); slab (ci,cj) = 2x2 block of the
    # 4x4 kernel, rows ordered (ri, rj, ic) to match the a1 s2d lane layout.
    w2p = jnp.transpose(w2, (2, 3, 1, 0)).reshape(2, 2, 2, 2, _C1, _C2)
    w2p = jnp.transpose(w2p, (0, 2, 1, 3, 4, 5)).reshape(4, 4 * _C1, _C2)
    # layer 3: (64,64,3,3) -> (9, 64, 64) per-tap slabs.
    w3p = jnp.transpose(w3, (2, 3, 1, 0)).reshape(9, _C2, _C3)
    return (w1p.astype(jnp.bfloat16), b1.reshape(1, -1).astype(jnp.float32),
            w2p.astype(jnp.bfloat16), b2.reshape(1, -1).astype(jnp.float32),
            w3p.astype(jnp.bfloat16), b3.reshape(1, -1).astype(jnp.float32))


@jax.jit
def cnn_encoder(x_nchw, packed):
    """Forward pass of CNNEncoder.  Input NCHW f32, output NCHW f32."""
    w1p, b1, w2p, b2, w3p, b3 = packed
    N, C, H, W = x_nchw.shape
    assert C == _C0
    OH1, OW1 = (H - 8) // 4 + 1, (W - 8) // 4 + 1
    OH2, OW2 = (OH1 - 4) // 2 + 1, (OW1 - 4) // 2 + 1
    OH3, OW3 = OH2 - 2, OW2 - 2
    assert OH3 >= 1 and OW3 >= 1, "input must be at least 36x36"
    A8, W8 = (OH1 + 2) // 2, (OW1 + 2) // 2     # 8x8-block grid of the input
    A1B, W1B = OH2 + 1, OW2 + 1                 # 2x2-block grid of a1
    assert A1B == A8 - 1 and W1B == W8 - 1
    RPI = _round_up(A8 * W8 + 1, 8)             # per-image row pitch

    # batch blocking: keep >=2 grid steps when N >= 2 (megacore friendly),
    # amortize per-step overhead and weight reloads across B_blk images.
    B_blk = min(8, max(1, N // 2))
    N_pad = _round_up(N, B_blk)
    if N_pad != N:
        x_nchw = jnp.pad(x_nchw, ((0, N_pad - N), (0, 0), (0, 0), (0, 0)))

    # Single entry layout op: crop to the used extent, zero-pad to 8-aligned,
    # 8x8 space-to-depth with lanes ordered (row-parity, col-parity, pi, pj, c)
    # and flatten to the flat (rows, 192) layout the kernel indexes.
    Hc, Wc = 4 * (OH1 + 1), 4 * (OW1 + 1)
    Hp, Wp = 8 * A8, 8 * W8
    xp = jnp.pad(x_nchw[:, :, :Hc, :Wc],
                 ((0, 0), (0, 0), (0, Hp - Hc), (0, Wp - Wc)))
    xp = xp.reshape(N_pad, _C0, A8, 2, 4, W8, 2, 4)
    xp = jnp.transpose(xp, (0, 2, 5, 3, 6, 4, 7, 1))    # n q8 w8 ra rb pi pj c
    xp = xp.reshape(N_pad, A8 * W8, 192)
    xp = jnp.pad(xp, ((0, 0), (0, RPI - A8 * W8), (0, 0)))
    xp = xp.reshape(N_pad * RPI, 192).astype(jnp.bfloat16)

    flops = 2 * N_pad * (OH1 * OW1 * 192 * _C1
                         + OH2 * OW2 * 512 * _C2
                         + OH3 * OW3 * 576 * _C3)
    bytes_accessed = (xp.size * 2
                      + (w1p.size + w2p.size + w3p.size) * 2
                      + (b1.size + b2.size + b3.size) * 4
                      + N_pad * RPI * _C3 * 4)

    out_flat = pl.pallas_call(
        _make_kernel(W8, A1B, OH2, OH3, RPI, B_blk),
        out_shape=jax.ShapeDtypeStruct((N_pad * RPI, _C3), jnp.float32),
        grid_spec=pltpu.PrefetchScalarGridSpec(
            num_scalar_prefetch=0,
            grid=(N_pad // B_blk,),
            in_specs=[
                pl.BlockSpec((B_blk * RPI, 192), lambda i: (i, 0)),
                pl.BlockSpec((4, 48, _C1), lambda i: (0, 0, 0)),
                pl.BlockSpec((1, _C1), lambda i: (0, 0)),
                pl.BlockSpec((4, 4 * _C1, _C2), lambda i: (0, 0, 0)),
                pl.BlockSpec((1, _C2), lambda i: (0, 0)),
                pl.BlockSpec((9, _C2, _C3), lambda i: (0, 0, 0)),
                pl.BlockSpec((1, _C3), lambda i: (0, 0)),
            ],
            out_specs=pl.BlockSpec((B_blk * RPI, _C3), lambda i: (i, 0)),
            scratch_shapes=[
                pltpu.VMEM((B_blk * RPI, 4 * _C1), jnp.bfloat16),   # a1 (s2d)
                pltpu.VMEM((B_blk * RPI, _C2), jnp.bfloat16),       # a2
            ],
        ),
        compiler_params=pltpu.CompilerParams(
            dimension_semantics=("parallel",)),
        cost_estimate=pl.CostEstimate(
            flops=flops, transcendentals=0, bytes_accessed=bytes_accessed),
    )(xp, w1p, b1, w2p, b2, w3p, b3)

    # Undo the flat/garbage-column packing (cheap, tiny array) and go to NCHW.
    out = out_flat.reshape(N_pad, RPI, _C3)[:N, :OH3 * W8, :]
    out = out.reshape(N, OH3, W8, _C3)[:, :, :OW3, :]
    return jnp.transpose(out, (0, 3, 1, 2))


# --------------------------- init & references ----------------------------- #
def init_params(key):
    shapes = [(_C1, _C0, 8, 8), (_C2, _C1, 4, 4), (_C3, _C2, 3, 3)]
    params = []
    for i, s in enumerate(shapes):
        kw_, kb_ = jax.random.split(jax.random.fold_in(key, i))
        fan_in = s[1] * s[2] * s[3]
        bound = float(fan_in) ** -0.5
        w = jax.random.uniform(kw_, s, jnp.float32, -bound, bound)
        b = jax.random.uniform(kb_, (s[0],), jnp.float32, -bound, bound)
        params.append((w, b))
    return params


def cnn_encoder_ref(x_nchw, params, compute_dtype=jnp.float32):
    """Pure-JAX reference; compute_dtype=bf16 matches the kernel's casts."""
    h = x_nchw
    for (w, b), s in zip(params, (4, 2, 1)):
        h = jax.lax.conv_general_dilated(
            h.astype(compute_dtype), w.astype(compute_dtype),
            window_strides=(s, s), padding="VALID",
            dimension_numbers=("NCHW", "OIHW", "NCHW"),
            preferred_element_type=jnp.float32)
        h = jnp.maximum(h + b.reshape(1, -1, 1, 1), 0.0)
    return h


if __name__ == "__main__":
    key = jax.random.PRNGKey(0)
    params = init_params(key)
    packed = pack_params(params)

    # 36x36 input: 36 -> 8 -> 3 -> 1, exercising all three conv layers;
    # batch 4 -> B_blk=2, grid=(2,), exercising the batched-M path.
    x = jax.random.normal(jax.random.fold_in(key, 123), (4, _C0, 36, 36),
                          jnp.float32)

    out = jax.block_until_ready(cnn_encoder(x, packed))
    assert out.shape == (4, _C3, 1, 1), out.shape

    # bf16-matched reference (same quantization points as the kernel).
    ref16 = jax.block_until_ready(cnn_encoder_ref(x, params, jnp.bfloat16))
    # full-f32 reference (loose tolerance: kernel uses bf16 MXU operands).
    ref32 = jax.block_until_ready(cnn_encoder_ref(x, params, jnp.float32))
    err16 = float(jnp.abs(out - ref16).max())
    err32 = float(jnp.abs(out - ref32).max())
    assert jnp.allclose(out, ref16, atol=2e-2, rtol=2e-2), err16
    assert jnp.allclose(out, ref32, atol=5e-2, rtol=5e-2), err32

    print("KERNEL_OK")
</pallas_src>

<mosaic_0001>
module attributes {stable_mosaic.version = 11 : i64} {
  func.func @kernel(%arg0: i32, %arg1: memref<64x192xbf16, #tpu.memory_space<vmem>>, %arg2: memref<4x48x32xbf16, #tpu.memory_space<vmem>>, %arg3: memref<1x32xf32, #tpu.memory_space<vmem>>, %arg4: memref<4x128x64xbf16, #tpu.memory_space<vmem>>, %arg5: memref<1x64xf32, #tpu.memory_space<vmem>>, %arg6: memref<9x64x64xbf16, #tpu.memory_space<vmem>>, %arg7: memref<1x64xf32, #tpu.memory_space<vmem>>, %arg8: memref<64x64xf32, #tpu.memory_space<vmem>>, %arg9: memref<64x128xbf16, #tpu.memory_space<vmem>>, %arg10: memref<64x64xbf16, #tpu.memory_space<vmem>>) attributes {dimension_semantics = [#tpu.dimension_semantics<parallel>], iteration_bounds = array<i64: 2>, scalar_prefetch = 0 : i64, scratch_operands = 2 : i64, tpu.core_type = #tpu.core_type<tc>, window_params = [{transform_indices = @transform_0, window_bounds = array<i64: 64, 192>}, {pipeline_mode = #tpu.pipeline_mode<synchronous>, transform_indices = @transform_1, window_bounds = array<i64: 4, 48, 32>}, {pipeline_mode = #tpu.pipeline_mode<synchronous>, transform_indices = @transform_2, window_bounds = array<i64: 1, 32>}, {pipeline_mode = #tpu.pipeline_mode<synchronous>, transform_indices = @transform_3, window_bounds = array<i64: 4, 128, 64>}, {pipeline_mode = #tpu.pipeline_mode<synchronous>, transform_indices = @transform_4, window_bounds = array<i64: 1, 64>}, {pipeline_mode = #tpu.pipeline_mode<synchronous>, transform_indices = @transform_5, window_bounds = array<i64: 9, 64, 64>}, {pipeline_mode = #tpu.pipeline_mode<synchronous>, transform_indices = @transform_6, window_bounds = array<i64: 1, 64>}, {transform_indices = @transform_7, window_bounds = array<i64: 64, 64>}]} {
    %c0 = arith.constant 0 : index
    %c0_0 = arith.constant 0 : index
    %0 = vector.load %arg3[%c0, %c0_0] : memref<1x32xf32, #tpu.memory_space<vmem>>, vector<1x32xf32>
    %c0_1 = arith.constant 0 : index
    %c0_2 = arith.constant 0 : index
    %1 = vector.load %arg5[%c0_1, %c0_2] : memref<1x64xf32, #tpu.memory_space<vmem>>, vector<1x64xf32>
    %c0_3 = arith.constant 0 : index
    %c0_4 = arith.constant 0 : index
    %2 = vector.load %arg7[%c0_3, %c0_4] : memref<1x64xf32, #tpu.memory_space<vmem>>, vector<1x64xf32>
    %c0_5 = arith.constant 0 : index
    %c0_6 = arith.constant 0 : index
    %c0_7 = arith.constant 0 : index
    %3 = vector.load %arg2[%c0_5, %c0_6, %c0_7] : memref<4x48x32xbf16, #tpu.memory_space<vmem>>, vector<1x48x32xbf16>
    %4 = vector.shape_cast %3 : vector<1x48x32xbf16> to vector<48x32xbf16>
    %c1 = arith.constant 1 : index
    %c0_8 = arith.constant 0 : index
    %c0_9 = arith.constant 0 : index
    %5 = vector.load %arg2[%c1, %c0_8, %c0_9] : memref<4x48x32xbf16, #tpu.memory_space<vmem>>, vector<1x48x32xbf16>
    %6 = vector.shape_cast %5 : vector<1x48x32xbf16> to vector<48x32xbf16>
    %c2 = arith.constant 2 : index
    %c0_10 = arith.constant 0 : index
    %c0_11 = arith.constant 0 : index
    %7 = vector.load %arg2[%c2, %c0_10, %c0_11] : memref<4x48x32xbf16, #tpu.memory_space<vmem>>, vector<1x48x32xbf16>
    %8 = vector.shape_cast %7 : vector<1x48x32xbf16> to vector<48x32xbf16>
    %c3 = arith.constant 3 : index
    %c0_12 = arith.constant 0 : index
    %c0_13 = arith.constant 0 : index
    %9 = vector.load %arg2[%c3, %c0_12, %c0_13] : memref<4x48x32xbf16, #tpu.memory_space<vmem>>, vector<1x48x32xbf16>
    %10 = vector.shape_cast %9 : vector<1x48x32xbf16> to vector<48x32xbf16>
    %cst = arith.constant 0.000000e+00 : bf16
    %11 = vector.broadcast %cst : bf16 to vector<12x128xbf16>
    %c52 = arith.constant 52 : index
    %c0_14 = arith.constant 0 : index
    %12 = vector.load %arg9[%c52, %c0_14] : memref<64x128xbf16, #tpu.memory_space<vmem>>, vector<12x128xbf16>
    tpu.vector_store %arg9[%c52, %c0_14], %11 {strides = array<i32>} : memref<64x128xbf16, #tpu.memory_space<vmem>>, vector<12x128xbf16>,
    %cst_15 = arith.constant 0.000000e+00 : bf16
    %13 = vector.broadcast %cst_15 : bf16 to vector<17x64xbf16>
    %c47 = arith.constant 47 : index
    %c0_16 = arith.constant 0 : index
    %14 = vector.load %arg10[%c47, %c0_16] : memref<64x64xbf16, #tpu.memory_space<vmem>>, vector<17x64xbf16>
    tpu.vector_store %arg10[%c47, %c0_16], %13 {strides = array<i32>} : memref<64x64xbf16, #tpu.memory_space<vmem>>, vector<17x64xbf16>,
    %cst_17 = arith.constant 0.000000e+00 : f32
    %15 = vector.broadcast %cst_17 : f32 to vector<52x32xf32>
    %c0_18 = arith.constant 0 : index
    %c0_19 = arith.constant 0 : index
    %16 = vector.load %arg1[%c0_18, %c0_19] : memref<64x192xbf16, #tpu.memory_space<vmem>>, vector<52x48xbf16>
    %cst_20 = arith.constant dense<0.000000e+00> : vector<52x32xf32>
    %17 = tpu.matmul %16, %4, %cst_20 {dimension_numbers = #tpu.dot_dimension_numbers<[1], [0], [0], [1], [0, 0, 1, 1], [], []>} : vector<52x48xbf16>, vector<48x32xbf16>, vector<52x32xf32> -> vector<52x32xf32>
    %18 = arith.addf %15, %17 : vector<52x32xf32>
    %c0_21 = arith.constant 0 : index
    %c48 = arith.constant 48 : index
    %19 = vector.load %arg1[%c0_21, %c48] : memref<64x192xbf16, #tpu.memory_space<vmem>>, vector<52x48xbf16>
    %cst_22 = arith.constant dense<0.000000e+00> : vector<52x32xf32>
    %20 = tpu.matmul %19, %6, %cst_22 {dimension_numbers = #tpu.dot_dimension_numbers<[1], [0], [0], [1], [0, 0, 1, 1], [], []>} : vector<52x48xbf16>, vector<48x32xbf16>, vector<52x32xf32> -> vector<52x32xf32>
    %21 = arith.addf %18, %20 : vector<52x32xf32>
    %c0_23 = arith.constant 0 : index
    %c96 = arith.constant 96 : index
    %22 = vector.load %arg1[%c0_23, %c96] : memref<64x192xbf16, #tpu.memory_space<vmem>>, vector<52x48xbf16>
    %cst_24 = arith.constant dense<0.000000e+00> : vector<52x32xf32>
    %23 = tpu.matmul %22, %8, %cst_24 {dimension_numbers = #tpu.dot_dimension_numbers<[1], [0], [0], [1], [0, 0, 1, 1], [], []>} : vector<52x48xbf16>, vector<48x32xbf16>, vector<52x32xf32> -> vector<52x32xf32>
    %24 = arith.addf %21, %23 : vector<52x32xf32>
    %c0_25 = arith.constant 0 : index
    %c144 = arith.constant 144 : index
    %25 = vector.load %arg1[%c0_25, %c144] : memref<64x192xbf16, #tpu.memory_space<vmem>>, vector<52x48xbf16>
    %cst_26 = arith.constant dense<0.000000e+00> : vector<52x32xf32>
    %26 = tpu.matmul %25, %10, %cst_26 {dimension_numbers = #tpu.dot_dimension_numbers<[1], [0], [0], [1], [0, 0, 1, 1], [], []>} : vector<52x48xbf16>, vector<48x32xbf16>, vector<52x32xf32> -> vector<52x32xf32>
    %27 = arith.addf %24, %26 : vector<52x32xf32>
    %28 = vector.broadcast %0 : vector<1x32xf32> to vector<52x32xf32>
    %29 = arith.addf %27, %28 : vector<52x32xf32>
    %cst_27 = arith.constant 0.000000e+00 : f32
    %30 = vector.broadcast %cst_27 : f32 to vector<52x32xf32>
    %31 = arith.maximumf %29, %30 : vector<52x32xf32>
    %32 = arith.truncf %31 : vector<52x32xf32> to vector<52x32xbf16>
    %c0_28 = arith.constant 0 : index
    %c0_29 = arith.constant 0 : index
    %33 = vector.load %arg9[%c0_28, %c0_29] : memref<64x128xbf16, #tpu.memory_space<vmem>>, vector<52x32xbf16>
    tpu.vector_store %arg9[%c0_28, %c0_29], %32 {strides = array<i32>} : memref<64x128xbf16, #tpu.memory_space<vmem>>, vector<52x32xbf16>,
    %cst_30 = arith.constant 0.000000e+00 : f32
    %34 = vector.broadcast %cst_30 : f32 to vector<52x32xf32>
    %c0_31 = arith.constant 0 : index
    %c48_32 = arith.constant 48 : index
    %35 = vector.load %arg1[%c0_31, %c48_32] : memref<64x192xbf16, #tpu.memory_space<vmem>>, vector<52x48xbf16>
    %cst_33 = arith.constant dense<0.000000e+00> : vector<52x32xf32>
    %36 = tpu.matmul %35, %4, %cst_33 {dimension_numbers = #tpu.dot_dimension_numbers<[1], [0], [0], [1], [0, 0, 1, 1], [], []>} : vector<52x48xbf16>, vector<48x32xbf16>, vector<52x32xf32> -> vector<52x32xf32>
    %37 = arith.addf %34, %36 : vector<52x32xf32>
    %c1_34 = arith.constant 1 : index
    %c0_35 = arith.constant 0 : index
    %38 = vector.load %arg1[%c1_34, %c0_35] : memref<64x192xbf16, #tpu.memory_space<vmem>>, vector<52x48xbf16>
    %cst_36 = arith.constant dense<0.000000e+00> : vector<52x32xf32>
    %39 = tpu.matmul %38, %6, %cst_36 {dimension_numbers = #tpu.dot_dimension_numbers<[1], [0], [0], [1], [0, 0, 1, 1], [], []>} : vector<52x48xbf16>, vector<48x32xbf16>, vector<52x32xf32> -> vector<52x32xf32>
    %40 = arith.addf %37, %39 : vector<52x32xf32>
    %c0_37 = arith.constant 0 : index
    %c144_38 = arith.constant 144 : index
    %41 = vector.load %arg1[%c0_37, %c144_38] : memref<64x192xbf16, #tpu.memory_space<vmem>>, vector<52x48xbf16>
    %cst_39 = arith.constant dense<0.000000e+00> : vector<52x32xf32>
    %42 = tpu.matmul %41, %8, %cst_39 {dimension_numbers = #tpu.dot_dimension_numbers<[1], [0], [0], [1], [0, 0, 1, 1], [], []>} : vector<52x48xbf16>, vector<48x32xbf16>, vector<52x32xf32> -> vector<52x32xf32>
    %43 = arith.addf %40, %42 : vector<52x32xf32>
    %c1_40 = arith.constant 1 : index
    %c96_41 = arith.constant 96 : index
    %44 = vector.load %arg1[%c1_40, %c96_41] : memref<64x192xbf16, #tpu.memory_space<vmem>>, vector<52x48xbf16>
    %cst_42 = arith.constant dense<0.000000e+00> : vector<52x32xf32>
    %45 = tpu.matmul %44, %10, %cst_42 {dimension_numbers = #tpu.dot_dimension_numbers<[1], [0], [0], [1], [0, 0, 1, 1], [], []>} : vector<52x48xbf16>, vector<48x32xbf16>, vector<52x32xf32> -> vector<52x32xf32>
    %46 = arith.addf %43, %45 : vector<52x32xf32>
    %47 = vector.broadcast %0 : vector<1x32xf32> to vector<52x32xf32>
    %48 = arith.addf %46, %47 : vector<52x32xf32>
    %cst_43 = arith.constant 0.000000e+00 : f32
    %49 = vector.broadcast %cst_43 : f32 to vector<52x32xf32>
    %50 = arith.maximumf %48, %49 : vector<52x32xf32>
    %51 = arith.truncf %50 : vector<52x32xf32> to vector<52x32xbf16>
    %c0_44 = arith.constant 0 : index
    %c32 = arith.constant 32 : index
    %52 = vector.load %arg9[%c0_44, %c32] : memref<64x128xbf16, #tpu.memory_space<vmem>>, vector<52x32xbf16>
    tpu.vector_store %arg9[%c0_44, %c32], %51 {strides = array<i32>} : memref<64x128xbf16, #tpu.memory_space<vmem>>, vector<52x32xbf16>,
    %cst_45 = arith.constant 0.000000e+00 : f32
    %53 = vector.broadcast %cst_45 : f32 to vector<52x32xf32>
    %c0_46 = arith.constant 0 : index
    %c96_47 = arith.constant 96 : index
    %54 = vector.load %arg1[%c0_46, %c96_47] : memref<64x192xbf16, #tpu.memory_space<vmem>>, vector<52x48xbf16>
    %cst_48 = arith.constant dense<0.000000e+00> : vector<52x32xf32>
    %55 = tpu.matmul %54, %4, %cst_48 {dimension_numbers = #tpu.dot_dimension_numbers<[1], [0], [0], [1], [0, 0, 1, 1], [], []>} : vector<52x48xbf16>, vector<48x32xbf16>, vector<52x32xf32> -> vector<52x32xf32>
    %56 = arith.addf %53, %55 : vector<52x32xf32>
    %c0_49 = arith.constant 0 : index
    %c144_50 = arith.constant 144 : index
    %57 = vector.load %arg1[%c0_49, %c144_50] : memref<64x192xbf16, #tpu.memory_space<vmem>>, vector<52x48xbf16>
    %cst_51 = arith.constant dense<0.000000e+00> : vector<52x32xf32>
    %58 = tpu.matmul %57, %6, %cst_51 {dimension_numbers = #tpu.dot_dimension_numbers<[1], [0], [0], [1], [0, 0, 1, 1], [], []>} : vector<52x48xbf16>, vector<48x32xbf16>, vector<52x32xf32> -> vector<52x32xf32>
    %59 = arith.addf %56, %58 : vector<52x32xf32>
    %c5 = arith.constant 5 : index
    %c0_52 = arith.constant 0 : index
    %60 = vector.load %arg1[%c5, %c0_52] : memref<64x192xbf16, #tpu.memory_space<vmem>>, vector<52x48xbf16>
    %cst_53 = arith.constant dense<0.000000e+00> : vector<52x32xf32>
    %61 = tpu.matmul %60, %8, %cst_53 {dimension_numbers = #tpu.dot_dimension_numbers<[1], [0], [0], [1], [0, 0, 1, 1], [], []>} : vector<52x48xbf16>, vector<48x32xbf16>, vector<52x32xf32> -> vector<52x32xf32>
    %62 = arith.addf %59, %61 : vector<52x32xf32>
    %c5_54 = arith.constant 5 : index
    %c48_55 = arith.constant 48 : index
    %63 = vector.load %arg1[%c5_54, %c48_55] : memref<64x192xbf16, #tpu.memory_space<vmem>>, vector<52x48xbf16>
    %cst_56 = arith.constant dense<0.000000e+00> : vector<52x32xf32>
    %64 = tpu.matmul %63, %10, %cst_56 {dimension_numbers = #tpu.dot_dimension_numbers<[1], [0], [0], [1], [0, 0, 1, 1], [], []>} : vector<52x48xbf16>, vector<48x32xbf16>, vector<52x32xf32> -> vector<52x32xf32>
    %65 = arith.addf %62, %64 : vector<52x32xf32>
    %66 = vector.broadcast %0 : vector<1x32xf32> to vector<52x32xf32>
    %67 = arith.addf %65, %66 : vector<52x32xf32>
    %cst_57 = arith.constant 0.000000e+00 : f32
    %68 = vector.broadcast %cst_57 : f32 to vector<52x32xf32>
    %69 = arith.maximumf %67, %68 : vector<52x32xf32>
    %70 = arith.truncf %69 : vector<52x32xf32> to vector<52x32xbf16>
    %c0_58 = arith.constant 0 : index
    %c64 = arith.constant 64 : index
    %71 = vector.load %arg9[%c0_58, %c64] : memref<64x128xbf16, #tpu.memory_space<vmem>>, vector<52x32xbf16>
    tpu.vector_store %arg9[%c0_58, %c64], %70 {strides = array<i32>} : memref<64x128xbf16, #tpu.memory_space<vmem>>, vector<52x32xbf16>,
    %cst_59 = arith.constant 0.000000e+00 : f32
    %72 = vector.broadcast %cst_59 : f32 to vector<52x32xf32>
    %c0_60 = arith.constant 0 : index
    %c144_61 = arith.constant 144 : index
    %73 = vector.load %arg1[%c0_60, %c144_61] : memref<64x192xbf16, #tpu.memory_space<vmem>>, vector<52x48xbf16>
    %cst_62 = arith.constant dense<0.000000e+00> : vector<52x32xf32>
    %74 = tpu.matmul %73, %4, %cst_62 {dimension_numbers = #tpu.dot_dimension_numbers<[1], [0], [0], [1], [0, 0, 1, 1], [], []>} : vector<52x48xbf16>, vector<48x32xbf16>, vector<52x32xf32> -> vector<52x32xf32>
    %75 = arith.addf %72, %74 : vector<52x32xf32>
    %c1_63 = arith.constant 1 : index
    %c96_64 = arith.constant 96 : index
    %76 = vector.load %arg1[%c1_63, %c96_64] : memref<64x192xbf16, #tpu.memory_space<vmem>>, vector<52x48xbf16>
    %cst_65 = arith.constant dense<0.000000e+00> : vector<52x32xf32>
    %77 = tpu.matmul %76, %6, %cst_65 {dimension_numbers = #tpu.dot_dimension_numbers<[1], [0], [0], [1], [0, 0, 1, 1], [], []>} : vector<52x48xbf16>, vector<48x32xbf16>, vector<52x32xf32> -> vector<52x32xf32>
    %78 = arith.addf %75, %77 : vector<52x32xf32>
    %c5_66 = arith.constant 5 : index
    %c48_67 = arith.constant 48 : index
    %79 = vector.load %arg1[%c5_66, %c48_67] : memref<64x192xbf16, #tpu.memory_space<vmem>>, vector<52x48xbf16>
    %cst_68 = arith.constant dense<0.000000e+00> : vector<52x32xf32>
    %80 = tpu.matmul %79, %8, %cst_68 {dimension_numbers = #tpu.dot_dimension_numbers<[1], [0], [0], [1], [0, 0, 1, 1], [], []>} : vector<52x48xbf16>, vector<48x32xbf16>, vector<52x32xf32> -> vector<52x32xf32>
    %81 = arith.addf %78, %80 : vector<52x32xf32>
    %c6 = arith.constant 6 : index
    %c0_69 = arith.constant 0 : index
    %82 = vector.load %arg1[%c6, %c0_69] : memref<64x192xbf16, #tpu.memory_space<vmem>>, vector<52x48xbf16>
    %cst_70 = arith.constant dense<0.000000e+00> : vector<52x32xf32>
    %83 = tpu.matmul %82, %10, %cst_70 {dimension_numbers = #tpu.dot_dimension_numbers<[1], [0], [0], [1], [0, 0, 1, 1], [], []>} : vector<52x48xbf16>, vector<48x32xbf16>, vector<52x32xf32> -> vector<52x32xf32>
    %84 = arith.addf %81, %83 : vector<52x32xf32>
    %85 = vector.broadcast %0 : vector<1x32xf32> to vector<52x32xf32>
    %86 = arith.addf %84, %85 : vector<52x32xf32>
    %cst_71 = arith.constant 0.000000e+00 : f32
    %87 = vector.broadcast %cst_71 : f32 to vector<52x32xf32>
    %88 = arith.maximumf %86, %87 : vector<52x32xf32>
    %89 = arith.truncf %88 : vector<52x32xf32> to vector<52x32xbf16>
    %c0_72 = arith.constant 0 : index
    %c96_73 = arith.constant 96 : index
    %90 = vector.load %arg9[%c0_72, %c96_73] : memref<64x128xbf16, #tpu.memory_space<vmem>>, vector<52x32xbf16>
    tpu.vector_store %arg9[%c0_72, %c96_73], %89 {strides = array<i32>} : memref<64x128xbf16, #tpu.memory_space<vmem>>, vector<52x32xbf16>,
    %cst_74 = arith.constant 0.000000e+00 : f32
    %91 = vector.broadcast %cst_74 : f32 to vector<47x64xf32>
    %c0_75 = arith.constant 0 : index
    %c0_76 = arith.constant 0 : index
    %92 = vector.load %arg9[%c0_75, %c0_76] : memref<64x128xbf16, #tpu.memory_space<vmem>>, vector<47x128xbf16>
    %c0_77 = arith.constant 0 : index
    %c0_78 = arith.constant 0 : index
    %c0_79 = arith.constant 0 : index
    %93 = vector.load %arg4[%c0_77, %c0_78, %c0_79] : memref<4x128x64xbf16, #tpu.memory_space<vmem>>, vector<1x128x64xbf16>
    %94 = vector.shape_cast %93 : vector<1x128x64xbf16> to vector<128x64xbf16>
    %cst_80 = arith.constant dense<0.000000e+00> : vector<47x64xf32>
    %95 = tpu.matmul %92, %94, %cst_80 {dimension_numbers = #tpu.dot_dimension_numbers<[1], [0], [0], [1], [0, 0, 1, 1], [], []>} : vector<47x128xbf16>, vector<128x64xbf16>, vector<47x64xf32> -> vector<47x64xf32>
    %96 = arith.addf %91, %95 : vector<47x64xf32>
    %c1_81 = arith.constant 1 : index
    %c0_82 = arith.constant 0 : index
    %97 = vector.load %arg9[%c1_81, %c0_82] : memref<64x128xbf16, #tpu.memory_space<vmem>>, vector<47x128xbf16>
    %c1_83 = arith.constant 1 : index
    %c0_84 = arith.constant 0 : index
    %c0_85 = arith.constant 0 : index
    %98 = vector.load %arg4[%c1_83, %c0_84, %c0_85] : memref<4x128x64xbf16, #tpu.memory_space<vmem>>, vector<1x128x64xbf16>
    %99 = vector.shape_cast %98 : vector<1x128x64xbf16> to vector<128x64xbf16>
    %cst_86 = arith.constant dense<0.000000e+00> : vector<47x64xf32>
    %100 = tpu.matmul %97, %99, %cst_86 {dimension_numbers = #tpu.dot_dimension_numbers<[1], [0], [0], [1], [0, 0, 1, 1], [], []>} : vector<47x128xbf16>, vector<128x64xbf16>, vector<47x64xf32> -> vector<47x64xf32>
    %101 = arith.addf %96, %100 : vector<47x64xf32>
    %c5_87 = arith.constant 5 : index
    %c0_88 = arith.constant 0 : index
    %102 = vector.load %arg9[%c5_87, %c0_88] : memref<64x128xbf16, #tpu.memory_space<vmem>>, vector<47x128xbf16>
    %c2_89 = arith.constant 2 : index
    %c0_90 = arith.constant 0 : index
    %c0_91 = arith.constant 0 : index
    %103 = vector.load %arg4[%c2_89, %c0_90, %c0_91] : memref<4x128x64xbf16, #tpu.memory_space<vmem>>, vector<1x128x64xbf16>
    %104 = vector.shape_cast %103 : vector<1x128x64xbf16> to vector<128x64xbf16>
    %cst_92 = arith.constant dense<0.000000e+00> : vector<47x64xf32>
    %105 = tpu.matmul %102, %104, %cst_92 {dimension_numbers = #tpu.dot_dimension_numbers<[1], [0], [0], [1], [0, 0, 1, 1], [], []>} : vector<47x128xbf16>, vector<128x64xbf16>, vector<47x64xf32> -> vector<47x64xf32>
    %106 = arith.addf %101, %105 : vector<47x64xf32>
    %c6_93 = arith.constant 6 : index
    %c0_94 = arith.constant 0 : index
    %107 = vector.load %arg9[%c6_93, %c0_94] : memref<64x128xbf16, #tpu.memory_space<vmem>>, vector<47x128xbf16>
    %c3_95 = arith.constant 3 : index
    %c0_96 = arith.constant 0 : index
    %c0_97 = arith.constant 0 : index
    %108 = vector.load %arg4[%c3_95, %c0_96, %c0_97] : memref<4x128x64xbf16, #tpu.memory_space<vmem>>, vector<1x128x64xbf16>
    %109 = vector.shape_cast %108 : vector<1x128x64xbf16> to vector<128x64xbf16>
    %cst_98 = arith.constant dense<0.000000e+00> : vector<47x64xf32>
    %110 = tpu.matmul %107, %109, %cst_98 {dimension_numbers = #tpu.dot_dimension_numbers<[1], [0], [0], [1], [0, 0, 1, 1], [], []>} : vector<47x128xbf16>, vector<128x64xbf16>, vector<47x64xf32> -> vector<47x64xf32>
    %111 = arith.addf %106, %110 : vector<47x64xf32>
    %112 = vector.broadcast %1 : vector<1x64xf32> to vector<47x64xf32>
    %113 = arith.addf %111, %112 : vector<47x64xf32>
    %cst_99 = arith.constant 0.000000e+00 : f32
    %114 = vector.broadcast %cst_99 : f32 to vector<47x64xf32>
    %115 = arith.maximumf %113, %114 : vector<47x64xf32>
    %116 = arith.truncf %115 : vector<47x64xf32> to vector<47x64xbf16>
    %c0_100 = arith.constant 0 : index
    %c0_101 = arith.constant 0 : index
    %117 = vector.load %arg10[%c0_100, %c0_101] : memref<64x64xbf16, #tpu.memory_space<vmem>>, vector<47x64xbf16>
    tpu.vector_store %arg10[%c0_100, %c0_101], %116 {strides = array<i32>} : memref<64x64xbf16, #tpu.memory_space<vmem>>, vector<47x64xbf16>,
    %cst_102 = arith.constant 0.000000e+00 : f32
    %118 = vector.broadcast %cst_102 : f32 to vector<37x64xf32>
    %c0_103 = arith.constant 0 : index
    %c0_104 = arith.constant 0 : index
    %119 = vector.load %arg10[%c0_103, %c0_104] : memref<64x64xbf16, #tpu.memory_space<vmem>>, vector<37x64xbf16>
    %c0_105 = arith.constant 0 : index
    %c0_106 = arith.constant 0 : index
    %c0_107 = arith.constant 0 : index
    %120 = vector.load %arg6[%c0_105, %c0_106, %c0_107] : memref<9x64x64xbf16, #tpu.memory_space<vmem>>, vector<1x64x64xbf16>
    %121 = vector.shape_cast %120 : vector<1x64x64xbf16> to vector<64x64xbf16>
    %cst_108 = arith.constant dense<0.000000e+00> : vector<37x64xf32>
    %122 = tpu.matmul %119, %121, %cst_108 {dimension_numbers = #tpu.dot_dimension_numbers<[1], [0], [0], [1], [0, 0, 1, 1], [], []>} : vector<37x64xbf16>, vector<64x64xbf16>, vector<37x64xf32> -> vector<37x64xf32>
    %123 = arith.addf %118, %122 : vector<37x64xf32>
    %c1_109 = arith.constant 1 : index
    %c0_110 = arith.constant 0 : index
    %124 = vector.load %arg10[%c1_109, %c0_110] : memref<64x64xbf16, #tpu.memory_space<vmem>>, vector<37x64xbf16>
    %c1_111 = arith.constant 1 : index
    %c0_112 = arith.constant 0 : index
    %c0_113 = arith.constant 0 : index
    %125 = vector.load %arg6[%c1_111, %c0_112, %c0_113] : memref<9x64x64xbf16, #tpu.memory_space<vmem>>, vector<1x64x64xbf16>
    %126 = vector.shape_cast %125 : vector<1x64x64xbf16> to vector<64x64xbf16>
    %cst_114 = arith.constant dense<0.000000e+00> : vector<37x64xf32>
    %127 = tpu.matmul %124, %126, %cst_114 {dimension_numbers = #tpu.dot_dimension_numbers<[1], [0], [0], [1], [0, 0, 1, 1], [], []>} : vector<37x64xbf16>, vector<64x64xbf16>, vector<37x64xf32> -> vector<37x64xf32>
    %128 = arith.addf %123, %127 : vector<37x64xf32>
    %c2_115 = arith.constant 2 : index
    %c0_116 = arith.constant 0 : index
    %129 = vector.load %arg10[%c2_115, %c0_116] : memref<64x64xbf16, #tpu.memory_space<vmem>>, vector<37x64xbf16>
    %c2_117 = arith.constant 2 : index
    %c0_118 = arith.constant 0 : index
    %c0_119 = arith.constant 0 : index
    %130 = vector.load %arg6[%c2_117, %c0_118, %c0_119] : memref<9x64x64xbf16, #tpu.memory_space<vmem>>, vector<1x64x64xbf16>
    %131 = vector.shape_cast %130 : vector<1x64x64xbf16> to vector<64x64xbf16>
    %cst_120 = arith.constant dense<0.000000e+00> : vector<37x64xf32>
    %132 = tpu.matmul %129, %131, %cst_120 {dimension_numbers = #tpu.dot_dimension_numbers<[1], [0], [0], [1], [0, 0, 1, 1], [], []>} : vector<37x64xbf16>, vector<64x64xbf16>, vector<37x64xf32> -> vector<37x64xf32>
    %133 = arith.addf %128, %132 : vector<37x64xf32>
    %c5_121 = arith.constant 5 : index
    %c0_122 = arith.constant 0 : index
    %134 = vector.load %arg10[%c5_121, %c0_122] : memref<64x64xbf16, #tpu.memory_space<vmem>>, vector<37x64xbf16>
    %c3_123 = arith.constant 3 : index
    %c0_124 = arith.constant 0 : index
    %c0_125 = arith.constant 0 : index
    %135 = vector.load %arg6[%c3_123, %c0_124, %c0_125] : memref<9x64x64xbf16, #tpu.memory_space<vmem>>, vector<1x64x64xbf16>
    %136 = vector.shape_cast %135 : vector<1x64x64xbf16> to vector<64x64xbf16>
    %cst_126 = arith.constant dense<0.000000e+00> : vector<37x64xf32>
    %137 = tpu.matmul %134, %136, %cst_126 {dimension_numbers = #tpu.dot_dimension_numbers<[1], [0], [0], [1], [0, 0, 1, 1], [], []>} : vector<37x64xbf16>, vector<64x64xbf16>, vector<37x64xf32> -> vector<37x64xf32>
    %138 = arith.addf %133, %137 : vector<37x64xf32>
    %c6_127 = arith.constant 6 : index
    %c0_128 = arith.constant 0 : index
    %139 = vector.load %arg10[%c6_127, %c0_128] : memref<64x64xbf16, #tpu.memory_space<vmem>>, vector<37x64xbf16>
    %c4 = arith.constant 4 : index
    %c0_129 = arith.constant 0 : index
    %c0_130 = arith.constant 0 : index
    %140 = vector.load %arg6[%c4, %c0_129, %c0_130] : memref<9x64x64xbf16, #tpu.memory_space<vmem>>, vector<1x64x64xbf16>
    %141 = vector.shape_cast %140 : vector<1x64x64xbf16> to vector<64x64xbf16>
    %cst_131 = arith.constant dense<0.000000e+00> : vector<37x64xf32>
    %142 = tpu.matmul %139, %141, %cst_131 {dimension_numbers = #tpu.dot_dimension_numbers<[1], [0], [0], [1], [0, 0, 1, 1], [], []>} : vector<37x64xbf16>, vector<64x64xbf16>, vector<37x64xf32> -> vector<37x64xf32>
    %143 = arith.addf %138, %142 : vector<37x64xf32>
    %c7 = arith.constant 7 : index
    %c0_132 = arith.constant 0 : index
    %144 = vector.load %arg10[%c7, %c0_132] : memref<64x64xbf16, #tpu.memory_space<vmem>>, vector<37x64xbf16>
    %c5_133 = arith.constant 5 : index
    %c0_134 = arith.constant 0 : index
    %c0_135 = arith.constant 0 : index
    %145 = vector.load %arg6[%c5_133, %c0_134, %c0_135] : memref<9x64x64xbf16, #tpu.memory_space<vmem>>, vector<1x64x64xbf16>
    %146 = vector.shape_cast %145 : vector<1x64x64xbf16> to vector<64x64xbf16>
    %cst_136 = arith.constant dense<0.000000e+00> : vector<37x64xf32>
    %147 = tpu.matmul %144, %146, %cst_136 {dimension_numbers = #tpu.dot_dimension_numbers<[1], [0], [0], [1], [0, 0, 1, 1], [], []>} : vector<37x64xbf16>, vector<64x64xbf16>, vector<37x64xf32> -> vector<37x64xf32>
    %148 = arith.addf %143, %147 : vector<37x64xf32>
    %c10 = arith.constant 10 : index
    %c0_137 = arith.constant 0 : index
    %149 = vector.load %arg10[%c10, %c0_137] : memref<64x64xbf16, #tpu.memory_space<vmem>>, vector<37x64xbf16>
    %c6_138 = arith.constant 6 : index
    %c0_139 = arith.constant 0 : index
    %c0_140 = arith.constant 0 : index
    %150 = vector.load %arg6[%c6_138, %c0_139, %c0_140] : memref<9x64x64xbf16, #tpu.memory_space<vmem>>, vector<1x64x64xbf16>
    %151 = vector.shape_cast %150 : vector<1x64x64xbf16> to vector<64x64xbf16>
    %cst_141 = arith.constant dense<0.000000e+00> : vector<37x64xf32>
    %152 = tpu.matmul %149, %151, %cst_141 {dimension_numbers = #tpu.dot_dimension_numbers<[1], [0], [0], [1], [0, 0, 1, 1], [], []>} : vector<37x64xbf16>, vector<64x64xbf16>, vector<37x64xf32> -> vector<37x64xf32>
    %153 = arith.addf %148, %152 : vector<37x64xf32>
    %c11 = arith.constant 11 : index
    %c0_142 = arith.constant 0 : index
    %154 = vector.load %arg10[%c11, %c0_142] : memref<64x64xbf16, #tpu.memory_space<vmem>>, vector<37x64xbf16>
    %c7_143 = arith.constant 7 : index
    %c0_144 = arith.constant 0 : index
    %c0_145 = arith.constant 0 : index
    %155 = vector.load %arg6[%c7_143, %c0_144, %c0_145] : memref<9x64x64xbf16, #tpu.memory_space<vmem>>, vector<1x64x64xbf16>
    %156 = vector.shape_cast %155 : vector<1x64x64xbf16> to vector<64x64xbf16>
    %cst_146 = arith.constant dense<0.000000e+00> : vector<37x64xf32>
    %157 = tpu.matmul %154, %156, %cst_146 {dimension_numbers = #tpu.dot_dimension_numbers<[1], [0], [0], [1], [0, 0, 1, 1], [], []>} : vector<37x64xbf16>, vector<64x64xbf16>, vector<37x64xf32> -> vector<37x64xf32>
    %158 = arith.addf %153, %157 : vector<37x64xf32>
    %c12 = arith.constant 12 : index
    %c0_147 = arith.constant 0 : index
    %159 = vector.load %arg10[%c12, %c0_147] : memref<64x64xbf16, #tpu.memory_space<vmem>>, vector<37x64xbf16>
    %c8 = arith.constant 8 : index
    %c0_148 = arith.constant 0 : index
    %c0_149 = arith.constant 0 : index
    %160 = vector.load %arg6[%c8, %c0_148, %c0_149] : memref<9x64x64xbf16, #tpu.memory_space<vmem>>, vector<1x64x64xbf16>
    %161 = vector.shape_cast %160 : vector<1x64x64xbf16> to vector<64x64xbf16>
    %cst_150 = arith.constant dense<0.000000e+00> : vector<37x64xf32>
    %162 = tpu.matmul %159, %161, %cst_150 {dimension_numbers = #tpu.dot_dimension_numbers<[1], [0], [0], [1], [0, 0, 1, 1], [], []>} : vector<37x64xbf16>, vector<64x64xbf16>, vector<37x64xf32> -> vector<37x64xf32>
    %163 = arith.addf %158, %162 : vector<37x64xf32>
    %164 = vector.broadcast %2 : vector<1x64xf32> to vector<37x64xf32>
    %165 = arith.addf %163, %164 : vector<37x64xf32>
    %cst_151 = arith.constant 0.000000e+00 : f32
    %166 = vector.broadcast %cst_151 : f32 to vector<37x64xf32>
    %167 = arith.maximumf %165, %166 : vector<37x64xf32>
    %c0_152 = arith.constant 0 : index
    %c0_153 = arith.constant 0 : index
    %168 = vector.load %arg8[%c0_152, %c0_153] : memref<64x64xf32, #tpu.memory_space<vmem>>, vector<37x64xf32>
    tpu.vector_store %arg8[%c0_152, %c0_153], %167 {strides = array<i32>} : memref<64x64xf32, #tpu.memory_space<vmem>>, vector<37x64xf32>,
    return
  }
  func.func @transform_0(%arg0: i32) -> (i32, i32) {
    %c0_i32 = arith.constant 0 : i32
    %c0_i32_0 = arith.constant 0 : i32
    return %arg0, %c0_i32 : i32, i32
  }
  func.func @transform_1(%arg0: i32) -> (i32, i32, i32) {
    %c0_i32 = arith.constant 0 : i32
    %c0_i32_0 = arith.constant 0 : i32
    %c0_i32_1 = arith.constant 0 : i32
    %c0_i32_2 = arith.constant 0 : i32
    return %c0_i32, %c0_i32_0, %c0_i32_1 : i32, i32, i32
  }
  func.func @transform_2(%arg0: i32) -> (i32, i32) {
    %c0_i32 = arith.constant 0 : i32
    %c0_i32_0 = arith.constant 0 : i32
    %c0_i32_1 = arith.constant 0 : i32
    return %c0_i32, %c0_i32_0 : i32, i32
  }
  func.func @transform_3(%arg0: i32) -> (i32, i32, i32) {
    %c0_i32 = arith.constant 0 : i32
    %c0_i32_0 = arith.constant 0 : i32
    %c0_i32_1 = arith.constant 0 : i32
    %c0_i32_2 = arith.constant 0 : i32
    return %c0_i32, %c0_i32_0, %c0_i32_1 : i32, i32, i32
  }
  func.func @transform_4(%arg0: i32) -> (i32, i32) {
    %c0_i32 = arith.constant 0 : i32
    %c0_i32_0 = arith.constant 0 : i32
    %c0_i32_1 = arith.constant 0 : i32
    return %c0_i32, %c0_i32_0 : i32, i32
  }
  func.func @transform_5(%arg0: i32) -> (i32, i32, i32) {
    %c0_i32 = arith.constant 0 : i32
    %c0_i32_0 = arith.constant 0 : i32
    %c0_i32_1 = arith.constant 0 : i32
    %c0_i32_2 = arith.constant 0 : i32
    return %c0_i32, %c0_i32_0, %c0_i32_1 : i32, i32, i32
  }
  func.func @transform_6(%arg0: i32) -> (i32, i32) {
    %c0_i32 = arith.constant 0 : i32
    %c0_i32_0 = arith.constant 0 : i32
    %c0_i32_1 = arith.constant 0 : i32
    return %c0_i32, %c0_i32_0 : i32, i32
  }
  func.func @transform_7(%arg0: i32) -> (i32, i32) {
    %c0_i32 = arith.constant 0 : i32
    %c0_i32_0 = arith.constant 0 : i32
    return %arg0, %c0_i32 : i32, i32
  }
}

</mosaic_0001>

<bundles_post_ra>
// kernel: cnn_encoder.1
= control target key start
LH: loop header
LB: loop body
LE: loop exit
PB: predicated region body
PF: predicated region fallthrough
CT: control target
= control target key end

     0   :  { %s5681_s24 = smov 0   ;;  %s6763_s0 = inlined_call_operand.vmem [shape: bf16[128,192], index: 0, kind: input, shape index: {}]   ;;  %s6764_s1 = inlined_call_operand.vmem [shape: bf16[4,48,32], index: 1, kind: input, shape index: {}]   ;;  %s6765_s2 = inlined_call_operand.vmem [shape: f32[1,32], index: 2, kind: input, shape index: {}]   ;;  %s6766_s3 = inlined_call_operand.vmem [shape: bf16[4,128,64], index: 3, kind: input, shape index: {}]   ;;  %s6767_s4 = inlined_call_operand.vmem [shape: f32[1,64], index: 4, kind: input, shape index: {}]   ;;  %s6768_s5 = inlined_call_operand.vmem [shape: bf16[9,64,64], index: 5, kind: input, shape index: {}]   ;;  %s6769_s6 = inlined_call_operand.vmem [shape: f32[1,64], index: 6, kind: input, shape index: {}]   ;;  %s6770_s7 = inlined_call_operand.vmem [shape: f32[128,64], index: 7, kind: output, shape index: {}]  }
   0x1 LB: > { %s4302_s25 = sadd.s32 4294967295, %s5631_s24   ;;  %p4306_p0 = scmp.ge.s32.totalorder %s5631_s24, 1  ;;  %s5631_s24 = sphi %s5681_s24, %s17_s24  }
   0x2   : > { %p239_p1 = scmp.lt.s32.totalorder %s5631_s24, 3 }
   0x4   : > { %p240_p2 = pnand %p4306_p0, %p239_p1 }
   0x5   : > { %s4307_s26 = sshll.u32 (!%p240_p2), %s4302_s25, 3  ;;  %v5523_v0 = vld [vmem:[%s6764_s1 + $0x18] sm:$0xff] (!%p240_p2)   ;;  %v5524_v1 = vld [vmem:[%s6764_s1] sm:$0xff] (!%p240_p2)   ;;  %v5528_v3 = vld [vmem:[%s6764_s1 + $0x8] sm:$0xff] (!%p240_p2)   ;;  %vm376_vm0 = vcmask (!%p240_p2), 392192   ;;  %s5633_s20 = smov (!%p240_p2), 80  }
   0x6   : > { %243 = sbr.rel (%p240_p2) target bundleno = 1228 (0x4cc), region = 48  ;;  %p273_p3 = scmp.lt.s32.totalorder (!%p240_p2), %s4307_s26, 15  ;;  %v5527_v2 = vld [vmem:[%s6764_s1 + $0x20] sm:$0xff] (!%p240_p2)   ;;  %4904 = vmatprep.subr.bf16.mxu1 (!%p240_p2), %v5523_v0  ;;  %4918 = vmatprep.subr.bf16.mxu0 (!%p240_p2), %v5524_v1  ;;  %v5707_v4 = vld [vmem:[%s6764_s1 + $0x28] sm:$0xff] (!%p240_p2)   ;;  %v5530_v5 = vld [vmem:[%s6764_s1 + $0x10] sm:$0xff] (!%p240_p2)   ;;  %vm599_vm3 = vcmask (!%p240_p2), 261120  }
   0x7   : > { %4905 = vmatpush3.bf16.msra.mxu1 (!%p240_p2), %v5523_v0  ;;  %4919 = vmatpush3.bf16.msra.mxu0 (!%p240_p2), %v5524_v1  ;;  %s5634_s21 = smov (!%p240_p2), 32   ;;  %v5769_v18 = vld [vmem:[%s6764_s1 + $0x30] sm:$0xff] (!%p240_p2)   ;;  %v5781_v21 = vld [vmem:[%s6764_s1 + $0x38] sm:$0xff] (!%p240_p2)   ;;  %v5788_v22 = vld [vmem:[%s6764_s1 + $0x40] sm:$0xff] (!%p240_p2)   ;;  %s5635_s30 = smov (!%p240_p2), 112   ;;  %vm2427_vm4 = vcmask (!%p240_p2), 1044480  }
   0x8   : > { %4906 = vmatprep.subr.bf16.mxu1 (!%p240_p2), %v5527_v2  ;;  %4920 = vmatprep.subr.bf16.mxu0 (!%p240_p2), %v5528_v3  ;;  %v5806_v28 = vld [vmem:[%s6764_s1 + $0x48] sm:$0xff] (!%p240_p2)   ;;  %vm895_vm1 = vsmask.f32 (!%p240_p2), 7424  ;;  %vm1716_vm2 = vsmask.f32 (!%p240_p2), 5376  ;;  %vm867_vm5 = vcmask (!%p240_p2), 254976  }
   0x9   : > { %vm5637_vm6 = vmmov (!%p240_p2), 0   ;;  %s5638_s8 = smov (!%p240_p2), 64   ;;  %s5639_s14 = smov (!%p240_p2), 96   ;;  %vm1441_vm7 = vcmask (!%p240_p2), 523520   ;;  %vm1960_vm8 = vcmask (!%p240_p2), 785920   ;;  %vm2552_vm9 = vcmask (!%p240_p2), 1048320  }
   0xa   : > { %vm1445_vm10 = vcmask (!%p240_p2), 517376   ;;  %vm1964_vm11 = vcmask (!%p240_p2), 779776   ;;  %vm2556_vm12 = vcmask (!%p240_p2), 1042176   ;;  %vm323_vm13 = vcmask (!%p240_p2), 523264  }
   0xb   : > { %4907 = vmatpush3.bf16.msra.mxu1 (!%p240_p2), %v5527_v2  ;;  %4921 = vmatpush3.bf16.msra.mxu0 (!%p240_p2), %v5528_v3  ;;  %vm317_vm14 = vcmask (!%p240_p2), 523271   ;;  %vm318_vm15 = vsmask.f32 (!%p240_p2), 7966 }
   0xc   : > { %4908 = vmatprep.subr.bf16.mxu1 (!%p240_p2), %v5707_v4  ;;  %4922 = vmatprep.subr.bf16.mxu0 (!%p240_p2), %v5530_v5 }
   0xd   : > { %s6772_s26 = smov (!%p273_p3, %s4307_s26), 15 }
   0xe   : > { %s4684_s12 = sshll.u32 %s6772_s26, 3 }
   0xf   : > { %s5714_s17 = scalar_lea.vmem %s6763_s0, %s4684_s12  ;;  %4909 = vmatpush3.bf16.msra.mxu1 %v5707_v4  ;;  %4923 = vmatpush3.bf16.msra.mxu0 %v5530_v5  ;;  %s283_s27 = scalar_lea.vmem %s6770_s7, %s4684_s12 }
  0x10   : > { %v5484_v6 = vld [vmem:[%s5714_s17 + $0x20] ss:$8 sps:$4 sm:$0xff]   ;;  %v5486_v8 = vld [vmem:[%s5714_s17 + $0x30] ss:$0 sps:$4 sm:$0x33]   ;;  %4960 = vmatprep.subr.bf16.mxu1 %v5523_v0  ;;  %4932 = vmatprep.subr.bf16.mxu0 %v5769_v18 }
  0x11   : > { %v5485_v7 = vld [vmem:[%s5714_s17] ss:$8 sps:$4 sm:$0xff]   ;;  %354 = vrot.lane.b32.xlu1 %v5484_v6, %s5633_s20  ;;  %v5487_v9 = vld [vmem:[%s5714_s17 + $0x10] ss:$8 sps:$4 sm:$0xff]   ;;  %v5748_v14 = vld [vmem:[%s5714_s17 + $0x4] ss:$8 sps:$4 sm:$0xff]  }
  0x12   : > { %350 = vrot.lane.b32.xlu0 %v5485_v7, %s5633_s20  ;;  %4924 = vmatprep.mubr.msk.bf16.mxu0 %vm376_vm0, %v5485_v7  ;;  %v5730_v10 = vld [vmem:[%s5714_s17 + $0x10] ss:$8 sps:$4 sm:$0xff]   ;;  %v5734_v11 = vld [vmem:[%s5714_s17] ss:$8 sps:$4 sm:$0xff]   ;;  %v5759_v16 = vld [vmem:[%s5714_s17 + $0x14] ss:$8 sps:$4 sm:$0xff]  }
  0x13   : > { %4925 = vmatmul.mubr.msk.bf16.vlgmr.msra.gmra.mrb[0].mxu0 %vm376_vm0, %v5487_v9  ;;  %v5490_v12 = vld [vmem:[%s5714_s17 + $0x30] ss:$0 sps:$4 sm:$0x33]   ;;  %v5744_v13 = vld [vmem:[%s5714_s17 + $0x20] ss:$8 sps:$4 sm:$0xff]   ;;  %v1257_v32 = vshll.u32 %v5748_v14, 16 }
  0x14   : > { %4928 = vmatprep.mubr.msk.bf16.mxu0 %vm376_vm0, %v5484_v6  ;;  %v5753_v15 = vld [vmem:[%s5714_s17] ss:$8 sps:$4 sm:$0xff]   ;;  %v5764_v17 = vld [vmem:[%s5714_s17 + $0x10] ss:$8 sps:$4 sm:$0xff]   ;;  %v5498_v19 = vld [vmem:[%s5714_s17 + $0x14] ss:$8 sps:$4 sm:$0xff]   ;;  %4933 = vmatpush3.bf16.msra.mxu0 %v5769_v18 }
  0x15   : > { %356 = vrot.lane.b32.xlu1 %v5486_v8, %s5633_s20  ;;  %v5499_v20 = vld [vmem:[%s5714_s17 + $0x4] ss:$8 sps:$4 sm:$0xff]   ;;  %4934 = vmatprep.subr.bf16.mxu0 %v5781_v21  ;;  %v1245_v24 = vshll.u32 %v5753_v15, 16  ;;  %v5797_v25 = vld [vmem:[%s5714_s17 + $0x20] ss:$8 sps:$4 sm:$0xff]   ;;  %v1243_v27 = vshrl.u32 %v5753_v15, 16 }
  0x16   : > { %352 = vrot.lane.b32.xlu0 %v5487_v9, %s5633_s20  ;;  %v5792_v23 = vld [vmem:[%s5714_s17 + $0x24] ss:$8 sps:$4 sm:$0xff]   ;;  %v553_v26 = vld [vmem:[%s5714_s17 + $0x30] sm:$0x33]  ;;  %v1250_v31 = vshll.u32 %v5764_v17, 16  ;;  %v908_v35 = vshrl.u32 %v5730_v10, 16 }
  0x17   : > { %v4355_v29 = vcombine.high %v553_v26, %v553_v26  ;;  %v1247_v30 = vrot.slane %v1245_v24, 1  ;;  %v4354_v33 = vcombine.low %v553_v26, %v553_v26  ;;  %v1212_v34 = vld [vmem:[%s5714_s17 + $0x30] sm:$0x77]  ;;  %v899_v36 = vshll.u32 %v5734_v11, 16  ;;  %v5506_v41 = vld [vmem:[%s5714_s17 + $0x24] ss:$8 sps:$4 sm:$0xff]  }
  0x18   : > { %4935 = vmatpush3.bf16.msra.mxu0 %v5781_v21  ;;  %v912_v37 = vshll.u32 %v5744_v13, 16  ;;  %v5505_v38 = vld [vmem:[%s5714_s17 + $0x34] ss:$0 sps:$4 sm:$0x33]   ;;  %v1262_v39 = vshll.u32 %v5759_v16, 16  ;;  %v5823_v40 = vcombine.low %v1212_v34, %v1212_v34  ;;  %v1252_v43 = vrot.slane %v1250_v31, 1 }
  0x19   : > { %1008 = vrot.lane.b32.xlu1 %v5730_v10, %s5633_s20  ;;  %4936 = vmatprep.subr.bf16.mxu0 %v5788_v22  ;;  %v1248_v42 = vor.u32 %v1247_v30, %v1243_v27  ;;  %v1255_v44 = vshrl.u32 %v5748_v14, 16  ;;  %v1259_v45 = vrot.slane %v1257_v32, 1  ;;  %v897_v46 = vshrl.u32 %v5734_v11, 16  ;;  %v5507_v53 = vld [vmem:[%s5714_s17 + $0x4] ss:$8 sps:$4 sm:$0xff]  }
  0x1a   : > { %1006 = vrot.lane.b32.xlu0 %v5734_v11, %s5633_s20  ;;  %v1274_v47 = vshrl.u32 %v5759_v16, 16  ;;  %v5830_v48 = vcombine.high %v1212_v34, %v1212_v34  ;;  %v901_v49 = vrot.slane %v899_v36, 1  ;;  %v1278_v50 = vshll.u32 %v5792_v23, 16  ;;  %v5508_v60 = vld [vmem:[%s5714_s17 + $0x14] ss:$8 sps:$4 sm:$0xff]  }
  0x1b   : > { %4929 = vmatmul.mubr.msk.bf16.gmra.mrb[4].mxu0 %vm376_vm0, %v5486_v8  ;;  %v1270_v51 = vshll.u32 %v5797_v25, 16  ;;  %v904_v52 = vshll.u32 %v5730_v10, 16  ;;  %v1264_v54 = vrot.slane %v1262_v39, 1  ;;  %v1286_v55 = vshll.u32 %v5823_v40, 16  ;;  %v1979_v10 = vld [vmem:[%s5714_s17 + $0x30] sm:$0x77] }
  0x1c   : > { %4937 = vmatpush3.bf16.msra.mxu0 %v5788_v22  ;;  %v5838_v56 = vrot.slane %v912_v37, 1  ;;  %v5842_v57 = vsel %vm895_vm1, %v1248_v42, %v1252_v43  ;;  %v1260_v58 = vor.u32 %v1259_v45, %v1255_v44  ;;  %v1266_v59 = vshrl.u32 %v5764_v17, 16  ;;  %v2269_v31 = vld [vmem:[%s5714_s17] sm:$0xc]  ;;  %v5510_v32 = vld [vmem:[%s5714_s17 + $0x24] ss:$8 sps:$4 sm:$0xff]  }
  0x1d   : > { %1012 = vrot.lane.b32.xlu1 %v5490_v12, %s5633_s20  ;;  %4946 = vmatprep.subr.bf16.mxu0 %v5806_v28  ;;  %v1276_v61 = vor.u32 %v1274_v47, %v1264_v54  ;;  %v1282_v62 = vshrl.u32 %v5797_v25, 16  ;;  %v1294_v63 = vshll.u32 %v5830_v48, 16  ;;  %v1280_v0 = vrot.slane %v1278_v50, 1  ;;  %v5869_v34 = vld [vmem:[%s5714_s17 + $0x10] ss:$8 sps:$4 sm:$0xff]  }
  0x1e   : > { %1010 = vrot.lane.b32.xlu0 %v5744_v13, %s5633_s20  ;;  %v1272_v1 = vrot.slane %v1270_v51, 1  ;;  %v1290_v2 = vshrl.u32 %v5792_v23, 16  ;;  %v1298_v3 = vshrl.u32 %v5823_v40, 16  ;;  %v1288_v5 = vrot.slane %v1286_v55, 1  ;;  %v5878_v39 = vld [vmem:[%s5714_s17 + $0x20] ss:$8 sps:$4 sm:$0xff]  }
  0x1f   : > { %v902_v6 = vor.u32 %v901_v49, %v897_v46  ;;  %v1265_v7 = vsel %vm895_vm1, %v1260_v58, %v1264_v54  ;;  %v1268_v8 = vor.u32 %v1266_v59, %v1252_v43  ;;  %v1301_v9 = vshrl.u32 %v5830_v48, 16  ;;  %v5511_v40 = vld [vmem:[%s5714_s17 + $0x34] ss:$0 sps:$4 sm:$0x33]  }
  0x20   : > { %v1296_v11 = vrot.slane %v1294_v63, 1  ;;  %v906_v12 = vrot.slane %v904_v52, 1  ;;  %v4446_v24 = vcombine.low %v1979_v10, %v1979_v10  ;;  %v4447_v27 = vcombine.high %v1979_v10, %v1979_v10  ;;  %v5514_v63 = vld [vmem:[%s5714_s17 + $0x14] ss:$8 sps:$4 sm:$0xff]   ;;  %v5539_v10 = vld [vmem:[%s5714_s17 + $0x20] ss:$8 sps:$4 sm:$0xff]  }
  0x21   : > { %585 = vrot.lane.b32.xlu1 %v5748_v14, %s5634_s21  ;;  %v1273_v30 = vsel %vm895_vm1, %v1268_v8, %v1272_v1  ;;  %v2306_v43 = vshrl.u32 %v5869_v34, 16  ;;  %v2309_v44 = vshll.u32 %v5869_v34, 16  ;;  %v2315_v47 = vshrl.u32 %v5878_v39, 16  ;;  %v1453_v8 = vld [vmem:[%s5714_s17 + $0x30] sm:$0x33] }
  0x22   : > { %583 = vrot.lane.b32.xlu0 %v5753_v15, %s5634_s21  ;;  %v5859_v26 = vsel %vm895_vm1, %v902_v6, %v906_v12  ;;  %v2065_v46 = vshrl.u32 %v4446_v24, 16  ;;  %v2318_v48 = vshll.u32 %v5878_v39, 16  ;;  %v2068_v50 = vshrl.u32 %v4447_v27, 16  ;;  %v5519_v6 = vld [vmem:[%s5714_s17 + $0x14] ss:$8 sps:$4 sm:$0xff]  }
  0x23   : > { %v2308_v54 = vrot.slane %v2306_v43, 2  ;;  %v2311_v55 = vrot.slane %v2309_v44, 3  ;;  %v1303_v58 = vor.u32 %v1301_v9, %v1296_v11  ;;  %v2317_v59 = vrot.slane %v2315_v47, 2  ;;  %v5926_v9 = vld [vmem:[%s5714_s17 + $0x30] ss:$8 sps:$4 sm:$0x1f]  }
  0x25   : > { %589 = vrot.lane.b32.xlu1 %v5759_v16, %s5634_s21 }
  0x26   : > { %587 = vrot.lane.b32.xlu0 %v5764_v17, %s5634_s21 }
  0x29   : > { %1117 = vrot.lane.b32.xlu1 %v5498_v19, %s5635_s30  ;;  %v1281_v19 = vsel %vm895_vm1, %v1276_v61, %v1280_v0  ;;  %v1300_v61 = vor.u32 %v1298_v3, %v1288_v5 }
  0x2a   : > { %1115 = vrot.lane.b32.xlu0 %v5499_v20, %s5635_s30  ;;  %v1284_v20 = vor.u32 %v1282_v62, %v1272_v1  ;;  %v5513_v62 = vld [vmem:[%s5714_s17 + $0x4] ss:$8 sps:$4 sm:$0xff]  }
  0x2c   : > { %v1289_v37 = vsel %vm895_vm1, %v1284_v20, %v1288_v5 }
  0x2d   : > { %593 = vrot.lane.b32.xlu1 %v5792_v23, %s5634_s21 }
  0x2e   : > { %591 = vrot.lane.b32.xlu0 %v5797_v25, %s5634_s21 }
  0x31   : > { %597 = vrot.lane.b32.xlu1 %v4355_v29, %s5634_s21  ;;  %v910_v29 = vor.u32 %v908_v35, %v906_v12  ;;  %v2061_v35 = vshll.u32 %v4447_v27, 16  ;;  %v2324_v12 = vshrl.u32 %v5926_v9, 16 }
  0x32   : > { %595 = vrot.lane.b32.xlu0 %v4354_v33, %s5634_s21  ;;  %v5866_v33 = vld [vmem:[%s5714_s17 + $0x8] sm:$0xf] }
  0x33   : > { %v5873_v36 = vsel %vm895_vm1, %v910_v29, %v5838_v56  ;;  %v4460_v42 = vcombine.low %v2269_v31, %v5866_v33  ;;  %v2063_v49 = vrot.slane %v2061_v35, 1  ;;  %v5525_v29 = vld [vmem:[%s5714_s17 + $0x24] ss:$8 sps:$4 sm:$0xff]   ;;  %v1735_v31 = vshrl.u32 %v5539_v10, 16 }
  0x35   : > { %1121 = vrot.lane.b32.xlu1 %v5505_v38, %s5635_s30  ;;  %v2053_v38 = vshll.u32 %v4446_v24, 16  ;;  %v2298_v52 = vshrl.u32 %v4460_v42, 16  ;;  %v2070_v3 = vor.u32 %v2068_v50, %v2063_v49  ;;  %v5526_v24 = vld [vmem:[%s5714_s17 + $0x34] ss:$0 sps:$4 sm:$0x33]  }
  0x36   : > { %1119 = vrot.lane.b32.xlu0 %v5506_v41, %s5635_s30  ;;  %v1292_v41 = vor.u32 %v1290_v2, %v1280_v0  ;;  %v5516_v0 = vld [vmem:[%s5714_s17 + $0x24] ss:$8 sps:$4 sm:$0xff]   ;;  %v5517_v2 = vld [vmem:[%s5714_s17 + $0x34] ss:$0 sps:$4 sm:$0x33]  }
  0x37   : > { %v2055_v45 = vrot.slane %v2053_v38, 1  ;;  %v2326_v38 = vrot.slane %v2324_v12, 2  ;;  %v5999_v12 = vld [vmem:[%s6764_s1 + $0x28] sm:$0xff]  }
  0x38   : > { %v1297_v51 = vsel %vm895_vm1, %v1292_v41, %v1296_v11 }
  0x39   : > { %1304 = vrot.lane.b32.xlu1 %v5842_v57, %s5634_s21  ;;  %v2056_v1 = vsel %vm895_vm1, %v1284_v20, %v2055_v45  ;;  %v2067_v5 = vor.u32 %v2065_v46, %v2055_v45  ;;  %v5536_v20 = vld [vmem:[%s5714_s17] ss:$8 sps:$4 sm:$0xfc]   ;;  %v1737_v46 = vrot.slane %v1735_v31, 2  ;;  %v6020_v31 = vld [vmem:[%s6764_s1 + $0x50] sm:$0xff]  }
  0x3a   : > { %730 = vrot.lane.b32.xlu0 %v5507_v53, %s5635_s30  ;;  %v2301_v53 = vshll.u32 %v4460_v42, 16  ;;  %v5541_v42 = vld [vmem:[%s5714_s17 + $0x30] ss:$8 sps:$4 sm:$0x1f]  }
  0x3c   : > { %v2303_v11 = vrot.slane %v2301_v53, 3  ;;  %v1747_v53 = vshll.u32 %v5541_v42, 16 }
  0x3d   : > { %732 = vrot.lane.b32.xlu1 %v5508_v60, %s5635_s30  ;;  %v2320_v60 = vrot.slane %v2318_v48, 3 }
  0x3e   : > { %1306 = vrot.lane.b32.xlu0 %v1265_v7, %s5634_s21 }
  0x3f   : > { %v2321_v27 = vor.u32 %v2320_v60, %v2317_v59 }
  0x41   : > { %1310 = vrot.lane.b32.xlu1 %v1281_v19, %s5634_s21 }
  0x42   : > { %1308 = vrot.lane.b32.xlu0 %v1273_v30, %s5634_s21 }
  0x45   : > { %1312 = vrot.lane.b32.xlu1 %v1289_v37, %s5634_s21 }
  0x46   : > { %734 = vrot.lane.b32.xlu0 %v5510_v32, %s5635_s30  ;;  %v1738_v32 = vshll.u32 %v5539_v10, 16  ;;  %v916_v10 = vshrl.u32 %v5744_v13, 16  ;;  %v6007_v13 = vld [vmem:[%s6764_s1] sm:$0xff]  }
  0x48   : > { %v1740_v47 = vrot.slane %v1738_v32, 3  ;;  %v6027_v32 = vld [vmem:[%s6764_s1 + $0x8] sm:$0xff]  }
  0x49   : > { %736 = vrot.lane.b32.xlu1 %v5511_v40, %s5635_s30  ;;  %v1718_v40 = vshrl.u32 %v5536_v20, 16 }
  0x4a   : > { %1314 = vrot.lane.b32.xlu0 %v1297_v51, %s5634_s21 }
  0x4b   : > { %v1720_v50 = vrot.slane %v1718_v40, 2  ;;  %v6042_v40 = vld [vmem:[%s6764_s1 + $0x10] sm:$0xff]  }
  0x4d   : > { %1318 = vrot.lane.b32.xlu1 %v1303_v58, %s5634_s21 }
  0x4e   : > { %1316 = vrot.lane.b32.xlu0 %v1300_v61, %s5634_s21 }
  0x51   : > { %2071 = vrot.lane.b32.xlu1 %v5842_v57, %s5634_s21  ;;  %v2064_v57 = vsel %vm895_vm1, %v1292_v41, %v2063_v49  ;;  %v1721_v41 = vshll.u32 %v5536_v20, 16  ;;  %v918_v20 = vor.u32 %v916_v10, %v5838_v56 }
  0x52   : > { %1479 = vrot.lane.b32.xlu0 %v5513_v62, %s5635_s30 }
  0x53   : > { %v1723_v51 = vrot.slane %v1721_v41, 3 }
  0x55   : > { %1481 = vrot.lane.b32.xlu1 %v5514_v63, %s5635_s30  ;;  %v1724_v61 = vor.u32 %v1723_v51, %v1720_v50  ;;  %v1749_v63 = vrot.slane %v1747_v53, 3 }
  0x56   : > { %2073 = vrot.lane.b32.xlu0 %v1265_v7, %s5634_s21  ;;  %v5520_v7 = vld [vmem:[%s5714_s17 + $0x4] ss:$8 sps:$4 sm:$0xff]  }
  0x59   : > { %2077 = vrot.lane.b32.xlu1 %v1281_v19, %s5634_s21  ;;  %v2327_v19 = vshll.u32 %v5926_v9, 16 }
  0x5a   : > { %2075 = vrot.lane.b32.xlu0 %v1273_v30, %s5634_s21 }
  0x5b   : > { %v2329_v35 = vrot.slane %v2327_v19, 3 }
  0x5d   : > { %2079 = vrot.lane.b32.xlu1 %v2056_v1, %s5634_s21  ;;  %v2330_v49 = vor.u32 %v2329_v35, %v2326_v38  ;;  %v6036_v38 = vld [vmem:[%s6764_s1 + $0x58] sm:$0xff]  }
  0x5e   : > { %1483 = vrot.lane.b32.xlu0 %v5516_v0, %s5635_s30 }
  0x5f   : > { %v2331_v59 = vsel %vm1716_vm2, %v2321_v27, %v2330_v49 }
  0x61   : > { %1485 = vrot.lane.b32.xlu1 %v5517_v2, %s5635_s30 }
  0x62   : > { %2081 = vrot.lane.b32.xlu0 %v2064_v57, %s5634_s21 }
  0x65   : > { %2085 = vrot.lane.b32.xlu1 %v2070_v3, %s5634_s21 }
  0x66   : > { %2083 = vrot.lane.b32.xlu0 %v2067_v5, %s5634_s21  ;;  %v5968_v5 = vld [vmem:[%s6764_s1 + $0x18] sm:$0xff]  }
  0x69   : > { %1594 = vrot.lane.b32.xlu1 %v5748_v14, %s5634_s21  ;;  %v5537_v14 = vld [vmem:[%s5714_s17 + $0x10] ss:$8 sps:$4 sm:$0xff]  }
  0x6a   : > { %1592 = vrot.lane.b32.xlu0 %v5753_v15, %s5634_s21  ;;  %v4423_v15 = vcombine.high %v1453_v8, %v1453_v8  ;;  %v1729_v30 = vshll.u32 %v5537_v14, 16 }
  0x6c   : > { %v1731_v45 = vrot.slane %v1729_v30, 3 }
  0x6d   : > { %1598 = vrot.lane.b32.xlu1 %v5759_v16, %s5634_s21  ;;  %v4422_v16 = vcombine.low %v1453_v8, %v1453_v8 }
  0x6e   : > { %1596 = vrot.lane.b32.xlu0 %v5764_v17, %s5634_s21  ;;  %v2300_v17 = vrot.slane %v2298_v52, 2  ;;  %v1744_v52 = vshrl.u32 %v5541_v42, 16 }
  0x70   : > { %v2304_v37 = vor.u32 %v2303_v11, %v2300_v17  ;;  %v1746_v62 = vrot.slane %v1744_v52, 2 }
  0x71   : > { %2187 = vrot.lane.b32.xlu1 %v5519_v6, %s5635_s30 }
  0x72   : > { %2185 = vrot.lane.b32.xlu0 %v5520_v7, %s5635_s30  ;;  %v5959_v3 = vor.u32 %v1749_v63, %v1746_v62  ;;  %v5976_v7 = vld [vmem:[%s6764_s1 + $0x20] sm:$0xff]  }
  0x75   : > { %1602 = vrot.lane.b32.xlu1 %v5792_v23, %s5634_s21  ;;  %v2312_v23 = vor.u32 %v2311_v55, %v2308_v54  ;;  %v1741_v55 = vor.u32 %v1740_v47, %v1737_v46 }
  0x76   : > { %1600 = vrot.lane.b32.xlu0 %v5797_v25, %s5634_s21  ;;  %v1726_v25 = vshrl.u32 %v5537_v14, 16 }
  0x77   : > { %v2322_v43 = vsel %vm1716_vm2, %v2312_v23, %v2321_v27  ;;  %v2313_v48 = vsel %vm1716_vm2, %v2304_v37, %v2312_v23  ;;  %v5983_v14 = vsel %vm1716_vm2, %v1741_v55, %v5959_v3 }
  0x78   : > { %v1728_v44 = vrot.slane %v1726_v25, 2 }
  0x79   : > { %1606 = vrot.lane.b32.xlu1 %v4423_v15, %s5634_s21  ;;  %v5542_v15 = vld [vmem:[%s5714_s17 + $0x30] ss:$0 sps:$4 sm:$0x77]  }
  0x7a   : > { %1604 = vrot.lane.b32.xlu0 %v4422_v16, %s5634_s21  ;;  %v1732_v54 = vor.u32 %v1731_v45, %v1728_v44  ;;  %v920_v11 = vshll.u32 %v5542_v15, 16  ;;  %v924_v30 = vshrl.u32 %v5542_v15, 16 }
  0x7c   : > { %v5954_v0 = vsel %vm1716_vm2, %v1732_v54, %v1741_v55  ;;  %v5957_v57 = vsel %vm1716_vm2, %v1724_v61, %v1732_v54 }
  0x7d   : > { %2191 = vrot.lane.b32.xlu1 %v5526_v24, %s5635_s30  ;;  %v922_v24 = vrot.slane %v920_v11, 1 }
  0x7e   : > { %2189 = vrot.lane.b32.xlu0 %v5525_v29, %s5635_s30 }
  0x7f   : > { %v926_v37 = vor.u32 %v924_v30, %v922_v24 }
  0x81   : > { %2334 = vrot.lane.b32.xlu1 %v2322_v43, %s5633_s20 }
  0x82   : > { %2332 = vrot.lane.b32.xlu0 %v2313_v48, %s5633_s20 }
  0x83   : > { %v355_v58 = vpop.permute.xlu1 %354 }
  0x84   : > { %v351_v60 = vpop.permute.xlu0 %350 }
  0x85   : > { %4910 = vmatprep.mubr.msk.bf16.mxu1 %vm376_vm0, %v351_v60  ;;  %2338 = vrot.lane.b32.xlu1 %v2330_v49, %s5633_s20 }
  0x86   : > { %2336 = vrot.lane.b32.xlu0 %v2331_v59, %s5633_s20 }
  0x87   : > { %v357_v1 = vpop.permute.xlu1 %356 }
  0x88   : > { %v353_v2 = vpop.permute.xlu0 %352 }
  0x89   : > { %4911 = vmatmul.mubr.msk.bf16.vlgmr.msra.gmra.mrb[0].mxu1 %vm376_vm0, %v353_v2  ;;  %1837 = vrot.lane.b32.xlu1 %v5954_v0, %s5633_s20 }
  0x8a   : > { %4914 = vmatprep.mubr.msk.bf16.mxu1 %vm376_vm0, %v355_v58  ;;  %4961 = vmatpush3.bf16.msra.mxu1 %v5968_v5 }
  0x8b   : > { %v5971_v6 = vpop.permute.xlu1 %1008  ;;  %4962 = vmatprep.subr.bf16.mxu1 %v5976_v7  ;;  %1835 = vrot.lane.b32.xlu0 %v5957_v57, %s5633_s20 }
  0x8c   : > { %v1007_v8 = vpop.permute.xlu0 %1006 }
  0x8d   : > { %1841 = vrot.lane.b32.xlu1 %v5959_v3, %s5633_s20 }
  0x8e   : > { %4963 = vmatpush3.bf16.msra.mxu1 %v5976_v7 }
  0x8f   : > { %v5989_v16 = vpop.permute.xlu1 %1012  ;;  %4964 = vmatprep.subr.bf16.mxu1 %v5707_v4  ;;  %1839 = vrot.lane.b32.xlu0 %v5983_v14, %s5633_s20 }
  0x90   : > { %v1011_v17 = vpop.permute.xlu0 %1010 }
  0x91   : > { %4915 = vmatmul.mubr.msk.bf16.gmra.mrb[4].mxu1 %vm376_vm0, %v357_v1 }
  0x92   : > { %4965 = vmatpush3.bf16.msra.mxu1 %v5999_v12  ;;  %4966 = vmatprep.mubr.msk.bf16.mxu1 %vm376_vm0, %v5859_v26  ;;  %v923_v26 = vsel %vm895_vm1, %v918_v20, %v922_v24 }
  0x93   : > { %v586_v4 = vpop.permute.xlu1 %585  ;;  %4974 = vmatprep.subr.bf16.mxu1 %v6007_v13 }
  0x94   : > { %v584_v19 = vpop.permute.xlu0 %583 }
  0x95   : > { %v600_v23 = vsel %vm599_vm3, %v584_v19, %v586_v4 }
  0x96   : > { %4938 = vmatprep.mubr.msk.bf16.mxu0 %vm376_vm0, %v600_v23 }
  0x97   : > { %v590_v27 = vpop.permute.xlu1 %589 }
  0x98   : > { %v588_v29 = vpop.permute.xlu0 %587 }
  0x99   : > { %v601_v25 = vsel %vm599_vm3, %v588_v29, %v590_v27  ;;  %4967 = vmatmul.mubr.msk.bf16.vlgmr.msra.gmra.mrb[8].mxu1 %vm376_vm0, %v5873_v36 }
  0x9a   : > { %4939 = vmatmul.mubr.msk.bf16.vlgmr.msra.gmra.mrb[0].mxu0 %vm376_vm0, %v601_v25  ;;  %4975 = vmatpush3.bf16.msra.mxu1 %v6007_v13 }
  0x9b   : > { %v1118_v56 = vpop.permute.xlu1 %1117  ;;  %4976 = vmatprep.subr.bf16.mxu1 %v6027_v32  ;;  %4970 = vmatprep.mubr.msk.bf16.mxu1 %vm376_vm0, %v923_v26 }
  0x9c   : > { %v1116_v36 = vpop.permute.xlu0 %1115  ;;  %4947 = vmatpush3.bf16.msra.mxu0 %v5806_v28 }
  0x9d   : > { %4948 = vmatprep.subr.bf16.mxu0 %v6020_v31 }
  0x9e   : > { %4977 = vmatpush3.bf16.msra.mxu1 %v6027_v32 }
  0x9f   : > { %v594_v35 = vpop.permute.xlu1 %593  ;;  %4978 = vmatprep.subr.bf16.mxu1 %v6042_v40 }
  0xa0   : > { %v592_v41 = vpop.permute.xlu0 %591  ;;  %4949 = vmatpush3.bf16.msra.mxu0 %v6020_v31 }
  0xa1   : > { %v602_v42 = vsel %vm599_vm3, %v592_v41, %v594_v35  ;;  %4971 = vmatmul.mubr.msk.bf16.gmra.mrb[12].mxu1 %vm376_vm0, %v926_v37  ;;  %4950 = vmatprep.subr.bf16.mxu0 %v6036_v38  ;;  %v5623_v37 = vld [vmem:[%s6764_s1 + $0x40] sm:$0xff]  }
  0xa2   : > { %4942 = vmatprep.mubr.msk.bf16.mxu0 %vm376_vm0, %v602_v42  ;;  %4980 = vmatprep.mubr.msk.bf16.mxu1 %vm376_vm0, %v1007_v8  ;;  %v5624_v42 = vld [vmem:[%s6764_s1 + $0x48] sm:$0xff]  }
  0xa3   : > { %v598_v43 = vpop.permute.xlu1 %597  ;;  %4979 = vmatpush3.bf16.msra.mxu1 %v6042_v40 }
  0xa4   : > { %v596_v44 = vpop.permute.xlu0 %595  ;;  %4988 = vmatprep.subr.bf16.mxu1 %v5769_v18  ;;  %4951 = vmatpush3.bf16.msra.mxu0 %v6036_v38 }
  0xa5   : > { %v603_v45 = vsel %vm599_vm3, %v596_v44, %v598_v43  ;;  %5016 = vmatprep.subr.bf16.mxu0 %v5968_v5 }
  0xa6   : > { %4943 = vmatmul.mubr.msk.bf16.gmra.mrb[8].mxu0 %vm376_vm0, %v603_v45 }
  0xa7   : > { %v1122_v46 = vpop.permute.xlu1 %1121 }
  0xa8   : > { %v1120_v47 = vpop.permute.xlu0 %1119 }
  0xa9   : > { %4981 = vmatmul.mubr.msk.bf16.vlgmr.msra.gmra.mrb[8].mxu1 %vm376_vm0, %v5971_v6 }
  0xaa   : > { %4984 = vmatprep.mubr.msk.bf16.mxu1 %vm376_vm0, %v1011_v17  ;;  %4989 = vmatpush3.bf16.msra.mxu1 %v5769_v18  ;;  %v5621_v17 = vld [vmem:[%s6764_s1 + $0x30] sm:$0xff]  }
  0xab   : > { %v1305_v48 = vpop.permute.xlu1 %1304  ;;  %4990 = vmatprep.subr.bf16.mxu1 %v5781_v21 }
  0xac   : > { %v731_v49 = vpop.permute.xlu0 %730 }
  0xad   : > { %4952 = vmatprep.mubr.msk.bf16.mxu0 %vm376_vm0, %v731_v49 }
  0xae   : > { %4991 = vmatpush3.bf16.msra.mxu1 %v5781_v21 }
  0xaf   : > { %v733_v50 = vpop.permute.xlu1 %732  ;;  %4992 = vmatprep.subr.bf16.mxu1 %v5788_v22 }
  0xb0   : > { %v1307_v51 = vpop.permute.xlu0 %1306  ;;  %4953 = vmatmul.mubr.msk.bf16.vlgmr.msra.gmra.mrb[0].mxu0 %vm376_vm0, %v733_v50  ;;  %v2423_v50 = vld [vmem:[%s5714_s17] sm:$0x8] }
  0xb1   : > { %4985 = vmatmul.mubr.msk.bf16.gmra.mrb[16].mxu1 %vm376_vm0, %v5989_v16  ;;  %5017 = vmatpush3.bf16.msra.mxu0 %v5968_v5  ;;  %v1320_v59 = vsel %vm599_vm3, %v1305_v48, %v1307_v51 }
  0xb2   : > { %4994 = vmatprep.mubr.msk.bf16.mxu1 %vm376_vm0, %v1116_v36  ;;  %4993 = vmatpush3.bf16.msra.mxu1 %v5788_v22 }
  0xb3   : > { %v1311_v18 = vpop.permute.xlu1 %1310  ;;  %5002 = vmatprep.subr.bf16.mxu1 %v5806_v28  ;;  %5018 = vmatprep.subr.bf16.mxu0 %v5976_v7 }
  0xb4   : > { %v1309_v21 = vpop.permute.xlu0 %1308 }
  0xb5   : > { %5019 = vmatpush3.bf16.msra.mxu0 %v5976_v7  ;;  %v1321_v62 = vsel %vm599_vm3, %v1309_v21, %v1311_v18  ;;  %v4468_v21 = vcombine.low %v2423_v50, %v5866_v33 }
  0xb6   : > { %5020 = vmatprep.subr.bf16.mxu0 %v5999_v12 }
  0xb7   : > { %v1313_v52 = vpop.permute.xlu1 %1312 }
  0xb8   : > { %v735_v53 = vpop.permute.xlu0 %734 }
  0xb9   : > { %4956 = vmatprep.mubr.msk.bf16.mxu0 %vm376_vm0, %v735_v53  ;;  %4995 = vmatmul.mubr.msk.bf16.vlgmr.msra.gmra.mrb[8].mxu1 %vm376_vm0, %v1118_v56  ;;  %v5622_v56 = vld [vmem:[%s6764_s1 + $0x38] sm:$0xff]  }
  0xba   : > { %4998 = vmatprep.mubr.msk.bf16.mxu1 %vm376_vm0, %v1120_v47  ;;  %5003 = vmatpush3.bf16.msra.mxu1 %v5806_v28 }
  0xbb   : > { %v737_v22 = vpop.permute.xlu1 %736  ;;  %5004 = vmatprep.subr.bf16.mxu1 %v6020_v31  ;;  %5021 = vmatpush3.bf16.msra.mxu0 %v5999_v12 }
  0xbc   : > { %v1315_v54 = vpop.permute.xlu0 %1314  ;;  %4957 = vmatmul.mubr.msk.bf16.gmra.mrb[12].mxu0 %vm376_vm0, %v737_v22  ;;  %5030 = vmatprep.subr.bf16.mxu0 %v6007_v13  ;;  %v2431_v22 = vrot.slane %v5878_v39, 3 }
  0xbd   : > { %v1322_v1 = vsel %vm599_vm3, %v1313_v52, %v1315_v54  ;;  %v2429_v52 = vrot.slane %v5869_v34, 3 }
  0xbe   : > { %5005 = vmatpush3.bf16.msra.mxu1 %v6020_v31 }
  0xbf   : > { %v1319_v55 = vpop.permute.xlu1 %1318  ;;  %5006 = vmatprep.subr.bf16.mxu1 %v6036_v38  ;;  %v2432_v54 = vsel %vm2427_vm4, %v2429_v52, %v2431_v22 }
  0xc0   : > { %v1317_v58 = vpop.permute.xlu0 %1316 }
  0xc1   : > { %4999 = vmatmul.mubr.msk.bf16.gmra.mrb[20].mxu1 %vm376_vm0, %v1122_v46  ;;  %v1323_v15 = vsel %vm599_vm3, %v1317_v58, %v1319_v55 }
  0xc2   : > { %5008 = vmatprep.mubr.msk.bf16.mxu1 %vm376_vm0, %v1320_v59  ;;  %5007 = vmatpush3.bf16.msra.mxu1 %v6036_v38 }
  0xc3   : > { %v2072_v28 = vpop.permute.xlu1 %2071  ;;  %5072 = vmatprep.subr.bf16.mxu1 %v5968_v5 }
  0xc4   : > { %v1480_v60 = vpop.permute.xlu0 %1479 }
  0xc5   : > { %5022 = vmatprep.mubr.msk.bf16.mxu0 %vm376_vm0, %v1480_v60 }
  0xc7   : > { %v1482_v61 = vpop.permute.xlu1 %1481 }
  0xc8   : > { %v2074_v63 = vpop.permute.xlu0 %2073  ;;  %5023 = vmatmul.mubr.msk.bf16.vlgmr.msra.gmra.mrb[16].mxu0 %vm376_vm0, %v1482_v61 }
  0xc9   : > { %5009 = vmatmul.mubr.msk.bf16.vlgmr.msra.gmra.mrb[8].mxu1 %vm376_vm0, %v1321_v62  ;;  %5031 = vmatpush3.bf16.msra.mxu0 %v6007_v13 }
  0xca   : > { %5012 = vmatprep.mubr.msk.bf16.mxu1 %vm376_vm0, %v1322_v1  ;;  %5073 = vmatpush3.bf16.msra.mxu1 %v5968_v5  ;;  %v2087_v5 = vsel %vm599_vm3, %v2072_v28, %v2074_v63 }
  0xcb   : > { %v2078_v2 = vpop.permute.xlu1 %2077  ;;  %5074 = vmatprep.subr.bf16.mxu1 %v5976_v7  ;;  %5032 = vmatprep.subr.bf16.mxu0 %v6027_v32 }
  0xcc   : > { %v2076_v6 = vpop.permute.xlu0 %2075 }
  0xcd   : > { %5033 = vmatpush3.bf16.msra.mxu0 %v6027_v32  ;;  %v2088_v4 = vsel %vm599_vm3, %v2076_v6, %v2078_v2 }
  0xce   : > { %5075 = vmatpush3.bf16.msra.mxu1 %v5976_v7  ;;  %5034 = vmatprep.subr.bf16.mxu0 %v6042_v40 }
  0xcf   : > { %v2080_v8 = vpop.permute.xlu1 %2079  ;;  %5076 = vmatprep.subr.bf16.mxu1 %v5999_v12 }
  0xd0   : > { %v1484_v16 = vpop.permute.xlu0 %1483 }
  0xd1   : > { %5013 = vmatmul.mubr.msk.bf16.gmra.mrb[24].mxu1 %vm376_vm0, %v1323_v15  ;;  %5026 = vmatprep.mubr.msk.bf16.mxu0 %vm376_vm0, %v1484_v16 }
  0xd2   : > { %5078 = vmatprep.mubr.msk.bf16.mxu1 %vm376_vm0, %v2087_v5  ;;  %5077 = vmatpush3.bf16.msra.mxu1 %v5999_v12 }
  0xd3   : > { %v1486_v10 = vpop.permute.xlu1 %1485  ;;  %5086 = vmatprep.subr.bf16.mxu1 %v6007_v13  ;;  %5035 = vmatpush3.bf16.msra.mxu0 %v6042_v40 }
  0xd4   : > { %v2082_v7 = vpop.permute.xlu0 %2081  ;;  %5027 = vmatmul.mubr.msk.bf16.gmra.mrb[20].mxu0 %vm376_vm0, %v1486_v10  ;;  %5044 = vmatprep.subr.bf16.mxu0 %v5621_v17 }
  0xd5   : > { %v2089_v20 = vsel %vm599_vm3, %v2080_v8, %v2082_v7 }
  0xd7   : > { %v2086_v11 = vpop.permute.xlu1 %2085 }
  0xd8   : > { %v2084_v19 = vpop.permute.xlu0 %2083 }
  0xd9   : > { %5079 = vmatmul.mubr.msk.bf16.vlgmr.msra.gmra.mrb[28].mxu1 %vm376_vm0, %v2088_v4  ;;  %v2090_v29 = vsel %vm599_vm3, %v2084_v19, %v2086_v11 }
  0xda   : > { %5082 = vmatprep.mubr.msk.bf16.mxu1 %vm376_vm0, %v2089_v20  ;;  %5087 = vmatpush3.bf16.msra.mxu1 %v6007_v13  ;;  %v6187_v20 = vld [vmem:[%s6765_s2] ss:$0 sm:$0xff] }
  0xdb   : > { %v1595_v12 = vpop.permute.xlu1 %1594  ;;  %5088 = vmatprep.subr.bf16.mxu1 %v6027_v32 }
  0xdc   : > { %v1593_v24 = vpop.permute.xlu0 %1592 }
  0xdd   : > { %v1608_v23 = vsel %vm599_vm3, %v1593_v24, %v1595_v12 }
  0xde   : > { %5036 = vmatprep.mubr.msk.bf16.mxu0 %vm376_vm0, %v1608_v23  ;;  %5089 = vmatpush3.bf16.msra.mxu1 %v6027_v32 }
  0xdf   : > { %v1599_v27 = vpop.permute.xlu1 %1598  ;;  %5090 = vmatprep.subr.bf16.mxu1 %v6042_v40 }
  0xe0   : > { %v1597_v26 = vpop.permute.xlu0 %1596 }
  0xe1   : > { %v1609_v25 = vsel %vm599_vm3, %v1597_v26, %v1599_v27  ;;  %5083 = vmatmul.mubr.msk.bf16.gmra.mrb[32].mxu1 %vm376_vm0, %v2090_v29 }
  0xe2   : > { %5037 = vmatmul.mubr.msk.bf16.vlgmr.msra.gmra.mrb[16].mxu0 %vm376_vm0, %v1609_v25  ;;  %5091 = vmatpush3.bf16.msra.mxu1 %v6042_v40 }
  0xe3   : > { %v2188_v13 = vpop.permute.xlu1 %2187  ;;  %5045 = vmatpush3.bf16.msra.mxu0 %v5621_v17  ;;  %5100 = vmatprep.subr.bf16.mxu1 %v5621_v17 }
  0xe4   : > { %v2186_v30 = vpop.permute.xlu0 %2185  ;;  %5046 = vmatprep.subr.bf16.mxu0 %v5622_v56 }
  0xe5   : > { %5092 = vmatprep.mubr.msk.bf16.mxu1 %vm376_vm0, %v2186_v30 }
  0xe7   : > { %v1603_v32 = vpop.permute.xlu1 %1602  ;;  %5047 = vmatpush3.bf16.msra.mxu0 %v5622_v56 }
  0xe8   : > { %v1601_v36 = vpop.permute.xlu0 %1600  ;;  %5048 = vmatprep.subr.bf16.mxu0 %v5623_v37 }
  0xe9   : > { %v1610_v35 = vsel %vm599_vm3, %v1601_v36, %v1603_v32  ;;  %5093 = vmatmul.mubr.msk.bf16.vlgmr.msra.gmra.mrb[28].mxu1 %vm376_vm0, %v2188_v13 }
  0xea   : > { %5040 = vmatprep.mubr.msk.bf16.mxu0 %vm376_vm0, %v1610_v35  ;;  %5101 = vmatpush3.bf16.msra.mxu1 %v5621_v17 }
  0xeb   : > { %v1607_v40 = vpop.permute.xlu1 %1606  ;;  %5102 = vmatprep.subr.bf16.mxu1 %v5622_v56  ;;  %5049 = vmatpush3.bf16.msra.mxu0 %v5623_v37 }
  0xec   : > { %v1605_v41 = vpop.permute.xlu0 %1604  ;;  %5058 = vmatprep.subr.bf16.mxu0 %v5624_v42 }
  0xed   : > { %v1611_v43 = vsel %vm599_vm3, %v1605_v41, %v1607_v40 }
  0xee   : > { %5041 = vmatmul.mubr.msk.bf16.gmra.mrb[24].mxu0 %vm376_vm0, %v1611_v43  ;;  %5103 = vmatpush3.bf16.msra.mxu1 %v5622_v56  ;;  %v4930_v46 = vpop.f32.mrb[4].mxu0 }
  0xef   : > { %v2192_v44 = vpop.permute.xlu1 %2191  ;;  %5104 = vmatprep.subr.bf16.mxu1 %v5623_v37  ;;  %5050 = vmatprep.mubr.msk.bf16.mxu0 %vm376_vm0, %v5957_v57  ;;  %v533_v47 = vpop.f32.mrb[5].mxu0 }
  0xf0   : > { %v2190_v45 = vpop.permute.xlu0 %2189  ;;  %v4931_v49 = vpop.f32.mrb[6].mxu0 }
  0xf1   : > { %5096 = vmatprep.mubr.msk.bf16.mxu1 %vm376_vm0, %v2190_v45  ;;  %v536_v51 = vpop.f32.mrb[7].mxu0 }
  0xf2   : > { %5097 = vmatmul.mubr.msk.bf16.gmra.mrb[36].mxu1 %vm376_vm0, %v2192_v44 }
  0xf3   : > { %5105 = vmatpush3.bf16.msra.mxu1 %v5623_v37  ;;  %v2335_v57 = vpop.permute.xlu1 %2334 }
  0xf4   : > { %v2333_v48 = vpop.permute.xlu0 %2332  ;;  %5114 = vmatprep.subr.bf16.mxu1 %v5624_v42 }
  0xf5   : > { %5106 = vmatprep.mubr.msk.bf16.mxu1 %vm376_vm0, %v2333_v48 }
  0xf6   : > { %5051 = vmatmul.mubr.msk.bf16.vlgmr.msra.gmra.mrb[16].mxu0 %vm376_vm0, %v5954_v0  ;;  %v2428_v0 = vrot.slane %v4468_v21, 3 }
  0xf7   : > { %5059 = vmatpush3.bf16.msra.mxu0 %v5624_v42  ;;  %5054 = vmatprep.mubr.msk.bf16.mxu0 %vm376_vm0, %v5983_v14  ;;  %v2339_v53 = vpop.permute.xlu1 %2338 }
  0xf8   : > { %5060 = vmatprep.subr.bf16.mxu0 %v6020_v31  ;;  %v2337_v18 = vpop.permute.xlu0 %2336  ;;  %v2430_v33 = vsel %vm2427_vm4, %v2428_v0, %v2429_v52 }
  0xfa   : > { %5107 = vmatmul.mubr.msk.bf16.vlgmr.msra.gmra.mrb[28].mxu1 %vm376_vm0, %v2335_v57 }
  0xfb   : > { %5115 = vmatpush3.bf16.msra.mxu1 %v5624_v42  ;;  %5061 = vmatpush3.bf16.msra.mxu0 %v6020_v31  ;;  %v1838_v34 = vpop.permute.xlu1 %1837 }
  0xfc   : > { %5116 = vmatprep.subr.bf16.mxu1 %v6020_v31  ;;  %5062 = vmatprep.subr.bf16.mxu0 %v6036_v38 }
  0xfd   : > { %5110 = vmatprep.mubr.msk.bf16.mxu1 %vm376_vm0, %v2337_v18  ;;  %v1836_v14 = vpop.permute.xlu0 %1835 }
  0xfe   : > { %5055 = vmatmul.mubr.msk.bf16.gmra.mrb[28].mxu0 %vm376_vm0, %v5959_v3 }
  0xff   : > { %5117 = vmatpush3.bf16.msra.mxu1 %v6020_v31  ;;  %5063 = vmatpush3.bf16.msra.mxu0 %v6036_v38  ;;  %v2433_v31 = vrot.slane %v5926_v9, 3  ;;  %v1842_v58 = vpop.permute.xlu1 %1841 }
 0x100   : > { %5118 = vmatprep.subr.bf16.mxu1 %v6036_v38  ;;  %5064 = vmatprep.mubr.msk.bf16.mxu0 %vm376_vm0, %v1836_v14 }
 0x101   : > { %v1840_v3 = vpop.permute.xlu0 %1839  ;;  %v2434_v55 = vsel %vm2427_vm4, %v2431_v22, %v2433_v31 }
 0x102   : > { %5111 = vmatmul.mubr.msk.bf16.gmra.mrb[40].mxu1 %vm376_vm0, %v2339_v53 }
 0x103   : > { %5119 = vmatpush3.bf16.msra.mxu1 %v6036_v38  ;;  %5120 = vmatprep.mubr.msk.bf16.mxu1 %vm376_vm0, %v2430_v33 }
 0x106   : > { %5065 = vmatmul.mubr.msk.bf16.vlgmr.msra.gmra.mrb[16].mxu0 %vm376_vm0, %v1838_v34 }
 0x107   : > { %5068 = vmatprep.mubr.msk.bf16.mxu0 %vm376_vm0, %v1840_v3 }
 0x10a   : > { %5121 = vmatmul.mubr.msk.bf16.vlgmr.msra.gmra.mrb[28].mxu1 %vm376_vm0, %v2432_v54 }
 0x10b   : > { %5124 = vmatprep.mubr.msk.bf16.mxu1 %vm376_vm0, %v2434_v55 }
 0x10e   : > { %5069 = vmatmul.mubr.msk.bf16.gmra.mrb[32].mxu0 %vm376_vm0, %v1842_v58 }
 0x112   : > { %5125 = vmatmul.mubr.msk.bf16.gmra.mrb[44].mxu1 %vm376_vm0, %v2433_v31  ;;  %vm319_vm0 = vmand %vm317_vm14, %vm318_vm15 }
 0x15c   : > { %v4912_v39 = vpop.f32.mrb[0].mxu1 }
 0x15d   : > { %v423_v38 = vpop.f32.mrb[1].mxu1 }
 0x15e   : > { %v4913_v9 = vpop.f32.mrb[2].mxu1 }
 0x15f   : > { %v426_v59 = vpop.f32.mrb[3].mxu1 }
 0x164   : > { %v4916_v28 = vpop.f32.mrb[4].mxu1 }
 0x165   : > { %v542_v60 = vadd.f32 %v4930_v46, %v4916_v28  ;;  %v439_v61 = vpop.f32.mrb[5].mxu1 }
 0x166   : > { %v534_v62 = vadd.f32 %v533_v47, %v439_v61  ;;  %v4917_v63 = vpop.f32.mrb[6].mxu1 }
 0x167   : > { %v442_v1 = vpop.f32.mrb[7].mxu1 }
 0x168   : > { %v537_v2 = vadd.f32 %v536_v51, %v442_v1 }
 0x174   : > { %v4972_v6 = vpop.f32.mrb[12].mxu1 }
 0x175   : > { %v989_v8 = vpop.f32.mrb[13].mxu1 }
 0x176   : > { %v4973_v15 = vpop.f32.mrb[14].mxu1 }
 0x177   : > { %v992_v16 = vpop.f32.mrb[15].mxu1 }
 0x179   : > { %v4944_v5 = vpop.f32.mrb[8].mxu0 }
 0x17a   : > { %v704_v10 = vadd.f32 %v4944_v5, %v542_v60  ;;  %v684_v7 = vpop.f32.mrb[9].mxu0 }
 0x17b   : > { %v702_v17 = vadd.f32 %v684_v7, %v534_v62  ;;  %v4945_v11 = vpop.f32.mrb[10].mxu0  ;;  %v5547_v62 = vld [vmem:[%s6766_s3] sm:$0xff]   ;;  %v5552_v7 = vld [vmem:[%s6766_s3 + $0x48] sm:$0xff]  }
 0x17c   : > { %v687_v4 = vpop.f32.mrb[11].mxu0 }
 0x17d   : > { %v703_v19 = vadd.f32 %v687_v4, %v537_v2  ;;  %v5636_v2 = vmov 0.0  }
 0x17e   : > { %5156 = vmatprep.subr.bf16.mxu1 %v5636_v2  ;;  %5128 = vmatprep.subr.bf16.mxu0 %v5636_v2 }
 0x17f   : > { %5157 = vmatpush3.bf16.msra.mxu1 %v5547_v62  ;;  %5172 = vmatprep.mubr.msk.bf16.mxu1 %vm5637_vm6, %v5636_v2 }
 0x180   : > { %5158 = vmatprep.subr.bf16.mxu1 %v5636_v2  ;;  %5144 = vmatprep.mubr.msk.bf16.mxu0 %vm5637_vm6, %v5636_v2 }
 0x183   : > { %v4954_v12 = vpop.f32.mrb[0].mxu0 }
 0x184   : > { %v5420_v24 = vadd.f32 %v4954_v12, %v4912_v39  ;;  %v4986_v23 = vpop.f32.mrb[16].mxu1  ;;  %v802_v27 = vpop.f32.mrb[1].mxu0 }
 0x185   : > { %v1085_v29 = vadd.f32 %v4986_v23, %v4972_v6  ;;  %v5421_v26 = vadd.f32 %v802_v27, %v423_v38  ;;  %v1076_v25 = vpop.f32.mrb[17].mxu1  ;;  %v4955_v13 = vpop.f32.mrb[2].mxu0  ;;  %v5550_v6 = vld [vmem:[%s6766_s3 + $0x40] sm:$0xff]   ;;  %v5554_v27 = vld [vmem:[%s6766_s3 + $0x50] sm:$0xff]  }
 0x186   : > { %v847_v30 = vadd.f32 %v5420_v24, %v6187_v20  ;;  %v1077_v56 = vadd.f32 %v1076_v25, %v989_v8  ;;  %v5422_v32 = vadd.f32 %v4955_v13, %v4913_v9  ;;  %v4987_v36 = vpop.f32.mrb[18].mxu1  ;;  %v805_v37 = vpop.f32.mrb[3].mxu0  ;;  %5129 = vmatpush3.bf16.msra.mxu0 %v5550_v6  ;;  %v5549_v24 = vld [vmem:[%s6766_s3 + $0x10] sm:$0xff]  }
 0x187   : > { %v845_v35 = vadd.f32 %v5421_v26, %v6187_v20  ;;  %v5423_v40 = vadd.f32 %v805_v37, %v426_v59  ;;  %v1079_v41 = vpop.f32.mrb[19].mxu1  ;;  %5130 = vmatprep.subr.bf16.mxu0 %v5636_v2 }
 0x188   : > { %v848_v42 = vadd.f32 %v5422_v32, %v6187_v20  ;;  %v1080_v43 = vadd.f32 %v1079_v41, %v992_v16  ;;  %v854_v45 = vmax.f32 %v847_v30, 0.0  ;;  %v5548_v16 = vld [vmem:[%s6766_s3 + $0x8] sm:$0xff]   ;;  %v5551_v32 = vld [vmem:[%s6766_s3 + $0x18] sm:$0xff]  }
 0x189   : > { %v846_v44 = vadd.f32 %v5423_v40, %v6187_v20  ;;  %v852_v47 = vmax.f32 %v845_v35, 0.0  ;;  %5159 = vmatpush3.bf16.msra.mxu1 %v5548_v16 }
 0x18a   : > { %v855_v46 = vmax.f32 %v848_v42, 0.0  ;;  %5160 = vmatprep.subr.bf16.mxu1 %v5636_v2  ;;  %5131 = vmatpush3.bf16.msra.mxu0 %v5552_v7 }
 0x18b   : > { %v853_v48 = vmax.f32 %v846_v44, 0.0  ;;  %5132 = vmatprep.subr.bf16.mxu0 %v5636_v2 }
 0x18c   : > { %v860_v49 = vpack.c.bf16 %v855_v46, %v854_v45  ;;  %v5553_v45 = vld [vmem:[%s6766_s3 + $0x20] sm:$0xff]  }
 0x18d   : > { %v859_v50 = vpack.c.bf16 %v853_v48, %v852_v47  ;;  %5161 = vmatpush3.bf16.msra.mxu1 %v5549_v24 }
 0x18e   : > { %865 = vst.msk [vmem:[#allocation2 + $0x8] sm:$0xff] %vm599_vm3, %v860_v49  ;;  %5162 = vmatprep.subr.bf16.mxu1 %v5636_v2  ;;  %5133 = vmatpush3.bf16.msra.mxu0 %v5554_v27 }
 0x18f   : > { %864 = vst.msk [vmem:[#allocation2] sm:$0xff] %vm599_vm3, %v859_v50  ;;  %v4958_v51 = vpop.f32.mrb[12].mxu0  ;;  %5134 = vmatprep.subr.bf16.mxu0 %v5636_v2 }
 0x190   : > { %v838_v57 = vadd.f32 %v4958_v51, %v704_v10  ;;  %v818_v18 = vpop.f32.mrb[13].mxu0 }
 0x191   : > { %v836_v21 = vadd.f32 %v818_v18, %v702_v17  ;;  %v4959_v0 = vpop.f32.mrb[14].mxu0  ;;  %5163 = vmatpush3.bf16.msra.mxu1 %v5551_v32 }
 0x192   : > { %v851_v52 = vadd.f32 %v6187_v20, %v838_v57  ;;  %v821_v53 = vpop.f32.mrb[15].mxu0  ;;  %5164 = vmatprep.subr.bf16.mxu1 %v5636_v2 }
 0x193   : > { %v849_v14 = vadd.f32 %v6187_v20, %v836_v21  ;;  %v837_v33 = vadd.f32 %v821_v53, %v703_v19 }
 0x194   : > { %v858_v34 = vmax.f32 %v851_v52, 0.0  ;;  %v5000_v22 = vpop.f32.mrb[20].mxu1 }
 0x195   : > { %v850_v3 = vadd.f32 %v6187_v20, %v837_v33  ;;  %v1205_v31 = vadd.f32 %v5000_v22, %v1085_v29  ;;  %v1185_v54 = vpop.f32.mrb[21].mxu1  ;;  %v856_v38 = vmax.f32 %v849_v14, 0.0  ;;  %5165 = vmatpush3.bf16.msra.mxu1 %v5553_v45 }
 0x196   : > { %v862_v55 = vpack.c.bf16 %v858_v34, %v858_v34  ;;  %v1203_v58 = vadd.f32 %v1185_v54, %v1077_v56  ;;  %v5001_v39 = vpop.f32.mrb[22].mxu1  ;;  %5166 = vmatprep.subr.bf16.mxu1 %v5636_v2 }
 0x197   : > { %v857_v9 = vmax.f32 %v850_v3, 0.0  ;;  %v1188_v59 = vpop.f32.mrb[23].mxu1 }
 0x198   : > { %v1204_v28 = vadd.f32 %v1188_v59, %v1080_v43  ;;  %868 = vst.msk [vmem:[#allocation2 + $0x18] sm:$0x3] %vm867_vm5, %v862_v55  ;;  %vm3880_vm5 = vcmask 1042432  }
 0x199   : > { %v861_v60 = vpack.c.bf16 %v857_v9, %v856_v38 }
 0x19b   : > { %866 = vst.msk [vmem:[#allocation2 + $0x10] sm:$0xff] %vm599_vm3, %v861_v60  ;;  %vm3168_vm3 = vmand %vm323_vm13, %vm895_vm1 }
 0x19c   : > { %v5010_v61 = vpop.f32.mrb[8].mxu1 }
 0x19d   : > { %v1409_v63 = vadd.f32 %v5010_v61, %v6187_v20  ;;  %v1370_v1 = vpop.f32.mrb[9].mxu1  ;;  %v5555_v61 = vld [vmem:[%s6766_s3 + $0x28] sm:$0xff]  }
 0x19e   : > { %v1407_v8 = vadd.f32 %v6187_v20, %v1370_v1  ;;  %v5011_v15 = vpop.f32.mrb[10].mxu1  ;;  %v5556_v1 = vld [vmem:[%s6766_s3 + $0x58] sm:$0xff]   ;;  %5167 = vmatpush3.bf16.msra.mxu1 %v5555_v61 }
 0x19f   : > { %v1410_v5 = vadd.f32 %v5011_v15, %v6187_v20  ;;  %v1373_v10 = vpop.f32.mrb[11].mxu1  ;;  %v1416_v11 = vmax.f32 %v1409_v63, 0.0  ;;  %5135 = vmatpush3.bf16.msra.mxu0 %v5556_v1  ;;  %5168 = vmatprep.subr.bf16.mxu1 %v5636_v2 }
 0x1a0   : > { %v1408_v17 = vadd.f32 %v6187_v20, %v1373_v10  ;;  %v1414_v19 = vmax.f32 %v1407_v8, 0.0  ;;  %5136 = vmatprep.subr.bf16.mxu0 %v5636_v2  ;;  %v5557_v10 = vld [vmem:[%s6766_s3 + $0x30] sm:$0xff]  }
 0x1a1   : > { %v1417_v4 = vmax.f32 %v1410_v5, 0.0 }
 0x1a2   : > { %v1415_v12 = vmax.f32 %v1408_v17, 0.0  ;;  %5169 = vmatpush3.bf16.msra.mxu1 %v5557_v10 }
 0x1a3   : > { %v1422_v23 = vpack.c.bf16 %v1417_v4, %v1416_v11  ;;  %v5558_v11 = vld [vmem:[%s6766_s3 + $0x60] sm:$0xff]   ;;  %5170 = vmatprep.subr.bf16.mxu1 %v5636_v2 }
 0x1a4   : > { %v1421_v29 = vpack.c.bf16 %v1415_v12, %v1414_v19  ;;  %v5014_v26 = vpop.f32.mrb[24].mxu1  ;;  %5137 = vmatpush3.bf16.msra.mxu0 %v5558_v11 }
 0x1a5   : > { %v6227_v25 = vadd.f32 %v5014_v26, %v1205_v31  ;;  %1431 = vrot.lane.b32.xlu0 %v1422_v23, %s5634_s21  ;;  %v1386_v13 = vpop.f32.mrb[25].mxu1  ;;  %5138 = vmatprep.subr.bf16.mxu0 %v5636_v2 }
 0x1a6   : > { %v1404_v30 = vadd.f32 %v1386_v13, %v1203_v58  ;;  %v5015_v56 = vpop.f32.mrb[26].mxu1 }
 0x1a7   : > { %v1389_v36 = vpop.f32.mrb[27].mxu1  ;;  %v5028_v37 = vpop.f32.mrb[20].mxu0 }
 0x1a8   : > { %v1411_v35 = vadd.f32 %v6187_v20, %v1404_v30  ;;  %v1405_v40 = vadd.f32 %v1389_v36, %v1204_v28  ;;  %v1549_v41 = vpop.f32.mrb[21].mxu0  ;;  %v5560_v30 = vld [vmem:[%s6766_s3 + $0x68] sm:$0xff]  }
 0x1a9   : > { %1429 = vrot.lane.b32.xlu0 %v1421_v29, %s5634_s21  ;;  %v5029_v42 = vpop.f32.mrb[22].mxu0  ;;  %v5559_v29 = vld [vmem:[%s6766_s3 + $0x38] sm:$0xff]   ;;  %5139 = vmatpush3.bf16.msra.mxu0 %v5560_v30  ;;  %v5561_v30 = vld [vmem:[%s6766_s3 + $0xc0] sm:$0xff]  }
 0x1aa   : > { %v1412_v43 = vadd.f32 %v6187_v20, %v1405_v40  ;;  %v1552_v44 = vpop.f32.mrb[23].mxu0  ;;  %v1418_v46 = vmax.f32 %v1411_v35, 0.0  ;;  %5171 = vmatpush3.bf16.msra.mxu1 %v5559_v29  ;;  %5140 = vmatprep.subr.bf16.mxu0 %v5636_v2 }
 0x1ab   : > { %5212 = vmatprep.subr.bf16.mxu1 %v5636_v2 }
 0x1ac   : > { %v1419_v47 = vmax.f32 %v1412_v43, 0.0 }
 0x1ae   : > { %v6242_v48 = vpack.c.bf16 %v1419_v47, %v1418_v46 }
 0x1b4   : > { %v5084_v49 = vpop.f32.mrb[32].mxu1 }
 0x1b5   : > { %v2153_v50 = vpop.f32.mrb[33].mxu1 }
 0x1b6   : > { %v5085_v51 = vpop.f32.mrb[34].mxu1 }
 0x1b7   : > { %v2156_v57 = vpop.f32.mrb[35].mxu1 }
 0x1c1   : > { %v5042_v18 = vpop.f32.mrb[24].mxu0 }
 0x1c2   : > { %v1683_v21 = vadd.f32 %v5042_v18, %v5028_v37  ;;  %v1674_v0 = vpop.f32.mrb[25].mxu0 }
 0x1c3   : > { %v1675_v52 = vadd.f32 %v1674_v0, %v1549_v41  ;;  %v5043_v53 = vpop.f32.mrb[26].mxu0 }
 0x1c4   : > { %v1677_v14 = vpop.f32.mrb[27].mxu0 }
 0x1c5   : > { %v1678_v33 = vadd.f32 %v1677_v14, %v1552_v44  ;;  %v5098_v34 = vpop.f32.mrb[36].mxu1 }
 0x1c6   : > { %v2264_v22 = vadd.f32 %v5098_v34, %v5084_v49  ;;  %v2255_v3 = vpop.f32.mrb[37].mxu1 }
 0x1c7   : > { %v2256_v31 = vadd.f32 %v2255_v3, %v2153_v50  ;;  %v5099_v54 = vpop.f32.mrb[38].mxu1 }
 0x1c8   : > { %v2258_v55 = vpop.f32.mrb[39].mxu1 }
 0x1c9   : > { %v2259_v58 = vadd.f32 %v2258_v55, %v2156_v57 }
 0x1d1   : > { %v5056_v39 = vpop.f32.mrb[28].mxu0 }
 0x1d2   : > { %v1834_v38 = vadd.f32 %v5056_v39, %v1683_v21  ;;  %v1814_v9 = vpop.f32.mrb[29].mxu0  ;;  %v5562_v21 = vld [vmem:[%s6766_s3 + $0x70] sm:$0xff]   ;;  %v5564_v39 = vld [vmem:[%s6766_s3 + $0x78] sm:$0xff]  }
 0x1d3   : > { %v6245_v59 = vadd.f32 %v1814_v9, %v1675_v52  ;;  %v5057_v28 = vpop.f32.mrb[30].mxu0  ;;  %5141 = vmatpush3.bf16.msra.mxu0 %v5562_v21 }
 0x1d4   : > { %v1817_v60 = vpop.f32.mrb[31].mxu0  ;;  %5142 = vmatprep.subr.bf16.mxu0 %v5636_v2  ;;  %v1413_v28 = vadd.f32 %v6187_v20, %v6227_v25 }
 0x1d5   : > { %v6250_v62 = vadd.f32 %v1817_v60, %v1678_v33  ;;  %v5112_v63 = vpop.f32.mrb[40].mxu1 }
 0x1d6   : > { %v6255_v6 = vadd.f32 %v5112_v63, %v2264_v22  ;;  %v2402_v8 = vpop.f32.mrb[41].mxu1  ;;  %v1420_v25 = vmax.f32 %v1413_v28, 0.0 }
 0x1d7   : > { %v6257_v15 = vadd.f32 %v2402_v8, %v2256_v31  ;;  %v5113_v16 = vpop.f32.mrb[42].mxu1  ;;  %5143 = vmatpush3.bf16.msra.mxu0 %v5564_v39  ;;  %v5574_v39 = vld [vmem:[%s6766_s3 + $0xa0] sm:$0xff]  }
 0x1d8   : > { %v2405_v5 = vpop.f32.mrb[43].mxu1  ;;  %5184 = vmatprep.subr.bf16.mxu0 %v5636_v2  ;;  %v1424_v11 = vpack.c.bf16 %v1420_v25, %v1420_v25 }
 0x1d9   : > { %v6264_v7 = vadd.f32 %v2405_v5, %v2259_v58  ;;  %v5066_v17 = vpop.f32.mrb[16].mxu0 }
 0x1da   : > { %v1928_v4 = vadd.f32 %v5066_v17, %v6187_v20  ;;  %v1889_v19 = vpop.f32.mrb[17].mxu0 }
 0x1db   : > { %v1926_v12 = vadd.f32 %v6187_v20, %v1889_v19  ;;  %v5067_v24 = vpop.f32.mrb[18].mxu0 }
 0x1dc   : > { %v1929_v23 = vadd.f32 %v5067_v24, %v6187_v20  ;;  %v1892_v27 = vpop.f32.mrb[19].mxu0  ;;  %v1935_v56 = vmax.f32 %v1928_v4, 0.0 }
 0x1dd   : > { %v1927_v26 = vadd.f32 %v6187_v20, %v1892_v27  ;;  %v5122_v13 = vpop.f32.mrb[28].mxu1  ;;  %v1933_v35 = vmax.f32 %v1926_v12, 0.0 }
 0x1de   : > { %v1936_v32 = vmax.f32 %v1929_v23, 0.0  ;;  %v2520_v36 = vadd.f32 %v5122_v13, %v6187_v20  ;;  %v2481_v37 = vpop.f32.mrb[29].mxu1 }
 0x1df   : > { %v1934_v40 = vmax.f32 %v1927_v26, 0.0  ;;  %v2518_v41 = vadd.f32 %v6187_v20, %v2481_v37  ;;  %v5123_v42 = vpop.f32.mrb[30].mxu1 }
 0x1e0   : > { %v1941_v43 = vpack.c.bf16 %v1936_v32, %v1935_v56  ;;  %v2521_v44 = vadd.f32 %v5123_v42, %v6187_v20  ;;  %v2484_v45 = vpop.f32.mrb[31].mxu1  ;;  %v2527_v50 = vmax.f32 %v2520_v36, 0.0 }
 0x1e1   : > { %v1940_v46 = vpack.c.bf16 %v1934_v40, %v1933_v35  ;;  %v2519_v47 = vadd.f32 %v6187_v20, %v2484_v45  ;;  %v5070_v49 = vpop.f32.mrb[32].mxu0  ;;  %v2525_v0 = vmax.f32 %v2518_v41, 0.0  ;;  %v5563_v35 = vld [vmem:[%s6766_s3 + $0xc8] sm:$0xff]  }
 0x1e2   : > { %v2528_v51 = vmax.f32 %v2521_v44, 0.0  ;;  %v1925_v57 = vadd.f32 %v5070_v49, %v1834_v38  ;;  %1950 = vrot.lane.b32.xlu0 %v1941_v43, %s5638_s8  ;;  %v1905_v18 = vpop.f32.mrb[33].mxu0 }
 0x1e3   : > { %v2526_v52 = vmax.f32 %v2519_v47, 0.0  ;;  %v1923_v53 = vadd.f32 %v1905_v18, %v6245_v59  ;;  %1948 = vrot.lane.b32.xlu1 %v1940_v46, %s5638_s8  ;;  %v5071_v14 = vpop.f32.mrb[34].mxu0  ;;  %v5565_v46 = vld [vmem:[%s6766_s3 + $0xd0] sm:$0xff]   ;;  %v5567_v18 = vld [vmem:[%s6766_s3 + $0xd8] sm:$0xff]  }
 0x1e4   : > { %v2533_v33 = vpack.c.bf16 %v2528_v51, %v2527_v50  ;;  %v1908_v34 = vpop.f32.mrb[35].mxu0  ;;  %v1932_v1 = vadd.f32 %v6187_v20, %v1925_v57  ;;  %v5566_v50 = vld [vmem:[%s6766_s3 + $0x80] sm:$0xff]  }
 0x1e5   : > { %v2532_v22 = vpack.c.bf16 %v2526_v52, %v2525_v0  ;;  %v1930_v3 = vadd.f32 %v6187_v20, %v1923_v53  ;;  %v1924_v31 = vadd.f32 %v1908_v34, %v6250_v62  ;;  %v5126_v54 = vpop.f32.mrb[44].mxu1  ;;  %v5568_v0 = vld [vmem:[%s6766_s3 + $0x88] sm:$0xff]  }
 0x1e6   : > { %v2517_v55 = vadd.f32 %v5126_v54, %v6255_v6  ;;  %v2497_v58 = vpop.f32.mrb[45].mxu1  ;;  %1433 = vrot.lane.b32.xlu0 %v6242_v48, %s5634_s21  ;;  %v1939_v17 = vmax.f32 %v1932_v1, 0.0  ;;  %v5572_v54 = vld [vmem:[%s6766_s3 + $0x98] sm:$0xff]  }
 0x1e7   : > { %v1931_v38 = vadd.f32 %v6187_v20, %v1924_v31  ;;  %v2515_v9 = vadd.f32 %v2497_v58, %v6257_v15  ;;  %v5127_v59 = vpop.f32.mrb[46].mxu1  ;;  %2540 = vrot.lane.b32.xlu1 %v2532_v22, %s5639_s14  ;;  %v1937_v61 = vmax.f32 %v1930_v3, 0.0  ;;  %v5640_v15 = vmov 0   ;;  %v5570_v22 = vld [vmem:[%s6766_s3 + $0x90] sm:$0xff]   ;;  %v5571_v31 = vld [vmem:[%s6766_s3 + $0xe8] sm:$0xff]  }
 0x1e8   : > { %v2500_v60 = vpop.f32.mrb[47].mxu1  ;;  %316 = vst [vmem:[#allocation2 + $0x18] sm:$0xfc] %v5640_v15  ;;  %v2524_v16 = vadd.f32 %v6187_v20, %v2517_v55  ;;  %v1943_v19 = vpack.c.bf16 %v1939_v17, %v1939_v17  ;;  %v5573_v58 = vld [vmem:[%s6766_s3 + $0xf0] sm:$0xff]   ;;  %v5576_v59 = vld [vmem:[%s6766_s3 + $0xa8] sm:$0xff]   ;;  %324 = vst.msk [vmem:[#allocation3 + $0x18] sm:$0xff] %vm323_vm13, %v5640_v15 }
 0x1e9   : > { %v1938_v62 = vmax.f32 %v1931_v38, 0.0  ;;  %v2522_v48 = vadd.f32 %v6187_v20, %v2515_v9  ;;  %v2516_v63 = vadd.f32 %v2500_v60, %v6264_v7  ;;  %v5575_v9 = vld [vmem:[%s6766_s3 + $0xf8] sm:$0xff]   ;;  %v5581_v15 = vld [vmem:[%s6768_s5 + $0x20] sm:$0xff]  }
 0x1ea   : > { %v2531_v4 = vmax.f32 %v2524_v16, 0.0  ;;  %v5578_v16 = vld [vmem:[%s6766_s3 + $0xb8] sm:$0xff]  }
 0x1eb   : > { %v2523_v6 = vadd.f32 %v6187_v20, %v2516_v63  ;;  %2542 = vrot.lane.b32.xlu1 %v2533_v33, %s5639_s14  ;;  %v1942_v8 = vpack.c.bf16 %v1938_v62, %v1937_v61  ;;  %v2529_v5 = vmax.f32 %v2522_v48, 0.0  ;;  %v5569_v33 = vld [vmem:[%s6766_s3 + $0xe0] sm:$0xff]   ;;  %v5577_v48 = vld [vmem:[%s6766_s3 + $0xb0] sm:$0xff]  }
 0x1ec   : > { %v2535_v12 = vpack.c.bf16 %v2531_v4, %v2531_v4 }
 0x1ed   : > { %v2530_v10 = vmax.f32 %v2523_v6, 0.0 }
 0x1ef   : > { %1952 = vrot.lane.b32.xlu1 %v1942_v8, %s5638_s8  ;;  %v2534_v7 = vpack.c.bf16 %v2530_v10, %v2529_v5 }
 0x1f1   : > { %2544 = vrot.lane.b32.xlu0 %v2534_v7, %s5639_s14 }
 0x1f3   : > { %1435 = vrot.lane.b32.xlu1 %v1424_v11, %s5634_s21 }
 0x1f5   : > { %1954 = vrot.lane.b32.xlu0 %v1943_v19, %s5638_s8 }
 0x1f7   : > { %2546 = vrot.lane.b32.xlu1 %v2535_v12, %s5639_s14 }
 0x217   : > { %v1432_v20 = vpop.permute.xlu0 %1431 }
 0x218   : > { %1443 = vst.msk [vmem:[#allocation2 + $0x8] sm:$0xff] %vm1441_vm7, %v1432_v20 }
 0x21b   : > { %v1430_v24 = vpop.permute.xlu0 %1429 }
 0x21c   : > { %1442 = vst.msk [vmem:[#allocation2] sm:$0xff] %vm1441_vm7, %v1430_v24 }
 0x254   : > { %v1951_v23 = vpop.permute.xlu0 %1950 }
 0x255   : > { %1962 = vst.msk [vmem:[#allocation2 + $0x8] sm:$0xff] %vm1960_vm8, %v1951_v23  ;;  %v1949_v27 = vpop.permute.xlu1 %1948 }
 0x256   : > { %1961 = vst.msk [vmem:[#allocation2] sm:$0xff] %vm1960_vm8, %v1949_v27 }
 0x258   : > { %v1434_v29 = vpop.permute.xlu0 %1433 }
 0x259   : > { %1444 = vst.msk [vmem:[#allocation2 + $0x10] sm:$0xff] %vm1441_vm7, %v1434_v29  ;;  %v2541_v26 = vpop.permute.xlu1 %2540  ;;  %vm4122_vm7 = vcmask 1041408  }
 0x25a   : > { %2553 = vst.msk [vmem:[#allocation2] sm:$0xff] %vm2552_vm9, %v2541_v26 }
 0x25d   : > { %v2543_v13 = vpop.permute.xlu1 %2542 }
 0x25e   : > { %2554 = vst.msk [vmem:[#allocation2 + $0x8] sm:$0xff] %vm2552_vm9, %v2543_v13 }
 0x261   : > { %v1953_v56 = vpop.permute.xlu1 %1952  ;;  %v2558_v32 = vld [vmem:[#allocation2] sm:$0xff] }
 0x262   : > { %1963 = vst.msk [vmem:[#allocation2 + $0x10] sm:$0xff] %vm1960_vm8, %v1953_v56  ;;  %v2597_v36 = vshll.u32 %v2558_v32, 16  ;;  %5173 = vmatmul.mubr.bf16.vlgmr.msra.gmra.mrb[48].mxu1 %v2558_v32  ;;  %v2595_v43 = vshrl.u32 %v2558_v32, 16  ;;  %v3000_v28 = vld [vmem:[#allocation2] sm:$0xf8] }
 0x263   : > { %5213 = vmatpush3.bf16.msra.mxu1 %v5561_v30  ;;  %v2545_v37 = vpop.permute.xlu0 %2544  ;;  %5176 = vmatprep.mubr.msk.bf16.mxu1 %vm5637_vm6, %v5636_v2  ;;  %v2830_v61 = vld [vmem:[#allocation2] sm:$0xfc]  ;;  %v3023_v62 = vrot.slane %v3000_v28, 3  ;;  %vm3989_vm8 = vsmask.f32 2304 }
 0x264   : > { %v2599_v40 = vrot.slane %v2597_v36, 1  ;;  %2555 = vst.msk [vmem:[#allocation2 + $0x10] sm:$0xff] %vm2552_vm9, %v2545_v37  ;;  %5214 = vmatprep.subr.bf16.mxu1 %v5636_v2  ;;  %v2852_v63 = vshrl.u32 %v2830_v61, 16  ;;  %v2855_v1 = vshll.u32 %v2830_v61, 16 }
 0x265   : > { %v1436_v41 = vpop.permute.xlu1 %1435  ;;  %v6336_v42 = vld [vmem:[#allocation2 + $0x8] sm:$0xff] }
 0x266   : > { %1446 = vst.msk [vmem:[#allocation2 + $0x18] sm:$0x3] %vm1445_vm10, %v1436_v41  ;;  %v2602_v44 = vshll.u32 %v6336_v42, 16  ;;  %v2600_v47 = vor.u32 %v2599_v40, %v2595_v43  ;;  %v2606_v53 = vshrl.u32 %v6336_v42, 16  ;;  %v3024_v60 = vrot.slane %v6336_v42, 3  ;;  %v5579_v40 = vld [vmem:[%s6768_s5] sm:$0xff]  }
 0x267   : > { %5215 = vmatpush3.bf16.msra.mxu1 %v5563_v35  ;;  %v1955_v45 = vpop.permute.xlu0 %1954  ;;  %v2854_v5 = vrot.slane %v2852_v63, 2  ;;  %v2857_v10 = vrot.slane %v2855_v1, 3  ;;  %v5580_v41 = vld [vmem:[%s6768_s5 + $0x8] sm:$0xff]   ;;  %v5584_v43 = vld [vmem:[%s6768_s5 + $0x18] sm:$0xff]  }
 0x268   : > { %1965 = vst.msk [vmem:[#allocation2 + $0x18] sm:$0x3] %vm1964_vm11, %v1955_v45  ;;  %5216 = vmatprep.subr.bf16.mxu1 %v5636_v2  ;;  %v2604_v49 = vrot.slane %v2602_v44, 1  ;;  %v3025_v6 = vsel %vm2427_vm4, %v3023_v62, %v3024_v60  ;;  %v2862_v8 = vrot.slane %v2606_v53, 2  ;;  %v2865_v25 = vrot.slane %v2602_v44, 3 }
 0x269   : > { %v2547_v51 = vpop.permute.xlu1 %2546  ;;  %v2858_v11 = vor.u32 %v2857_v10, %v2854_v5  ;;  %v320_v44 = vld [vmem:[#allocation3 + $0x10] sm:$0x80] }
 0x26a   : > { %2557 = vst.msk [vmem:[#allocation2 + $0x18] sm:$0x3] %vm2556_vm12, %v2547_v51  ;;  %5177 = vmatmul.mubr.bf16.gmra.mrb[52].mxu1 %v6336_v42  ;;  %v2605_v57 = vsel %vm895_vm1, %v2600_v47, %v2604_v49  ;;  %v2608_v34 = vor.u32 %v2606_v53, %v2604_v49  ;;  %v2866_v7 = vor.u32 %v2865_v25, %v2862_v8  ;;  %v5582_v42 = vld [vmem:[%s6768_s5 + $0x10] sm:$0xff]   ;;  %v321_v45 = vsel %vm319_vm0, 0, %v320_v44  ;;  %v5586_v49 = vld [vmem:[%s6768_s5 + $0x38] sm:$0xff]  }
 0x26b   : > { %5217 = vmatpush3.bf16.msra.mxu1 %v5565_v46  ;;  %5145 = vmatmul.mubr.bf16.vlgmr.msra.gmra.mrb[36].mxu0 %v2605_v57  ;;  %v6353_v21 = vld [vmem:[#allocation2 + $0x10] sm:$0xff]  ;;  %v5583_v46 = vld [vmem:[%s6768_s5 + $0x28] sm:$0xff]   ;;  %322 = vst [vmem:[#allocation3 + $0x10] sm:$0x80] %v321_v45 }
 0x26c   : > { %5185 = vmatpush3.bf16.msra.mxu0 %v5566_v50  ;;  %5218 = vmatprep.subr.bf16.mxu1 %v5636_v2  ;;  %v2610_v52 = vshll.u32 %v6353_v21, 16  ;;  %v2614_v55 = vshrl.u32 %v6353_v21, 16  ;;  %v3026_v17 = vrot.slane %v6353_v21, 3  ;;  %v2867_v19 = vsel %vm1716_vm2, %v2858_v11, %v2866_v7  ;;  %v5585_v47 = vld [vmem:[%s6768_s5 + $0x30] sm:$0xff]  }
 0x26d   : > { %5186 = vmatprep.subr.bf16.mxu0 %v5636_v2  ;;  %5180 = vmatprep.mubr.msk.bf16.mxu1 %vm5637_vm6, %v5636_v2 }
 0x26e   : > { %5148 = vmatprep.mubr.msk.bf16.mxu0 %vm5637_vm6, %v5636_v2  ;;  %v2612_v14 = vrot.slane %v2610_v52, 1  ;;  %v3027_v4 = vsel %vm2427_vm4, %v3024_v60, %v3026_v17  ;;  %v2871_v20 = vrot.slane %v2614_v55, 2  ;;  %v2874_v24 = vrot.slane %v2610_v52, 3 }
 0x26f   : > { %5219 = vmatpush3.bf16.msra.mxu1 %v5567_v18 }
 0x270   : > { %5187 = vmatpush3.bf16.msra.mxu0 %v5568_v0  ;;  %5220 = vmatprep.subr.bf16.mxu1 %v5636_v2  ;;  %v2613_v3 = vsel %vm895_vm1, %v2608_v34, %v2612_v14  ;;  %v2616_v38 = vor.u32 %v2614_v55, %v2612_v14  ;;  %v2875_v29 = vor.u32 %v2874_v24, %v2871_v20  ;;  %v4553_v20 = vld [vmem:[%s6767_s4] ss:$0 sm:$0xff] }
 0x271   : > { %5188 = vmatprep.subr.bf16.mxu0 %v5636_v2  ;;  %v3001_v12 = vld [vmem:[#allocation2 + $0x18] sm:$0x7] }
 0x272   : > { %5181 = vmatmul.mubr.bf16.gmra.mrb[56].mxu1 %v6353_v21  ;;  %v2833_v23 = vld [vmem:[#allocation2 + $0x18] sm:$0x3]  ;;  %v3028_v27 = vrot.slane %v3001_v12, 3  ;;  %v2876_v56 = vsel %vm1716_vm2, %v2866_v7, %v2875_v29 }
 0x273   : > { %5221 = vmatpush3.bf16.msra.mxu1 %v5569_v33  ;;  %5149 = vmatmul.mubr.bf16.gmra.mrb[40].mxu0 %v2613_v3  ;;  %v2878_v26 = vshrl.u32 %v2833_v23, 16  ;;  %v2881_v13 = vshll.u32 %v2833_v23, 16 }
 0x274   : > { %5189 = vmatpush3.bf16.msra.mxu0 %v5570_v22  ;;  %5222 = vmatprep.subr.bf16.mxu1 %v5636_v2  ;;  %v3029_v30 = vsel %vm2427_vm4, %v3026_v17, %v3028_v27 }
 0x275   : > { %5190 = vmatprep.subr.bf16.mxu0 %v5636_v2  ;;  %5152 = vmatprep.mubr.msk.bf16.mxu0 %vm5637_vm6, %v5636_v2  ;;  %v2880_v32 = vrot.slane %v2878_v26, 2  ;;  %v2883_v36 = vrot.slane %v2881_v13, 3 }
 0x276   : > { %5228 = vmatprep.mubr.msk.bf16.mxu1 %vm5637_vm6, %v5636_v2 }
 0x277   : > { %5223 = vmatpush3.bf16.msra.mxu1 %v5571_v31  ;;  %v2884_v37 = vor.u32 %v2883_v36, %v2880_v32 }
 0x278   : > { %5191 = vmatpush3.bf16.msra.mxu0 %v5572_v54  ;;  %5224 = vmatprep.subr.bf16.mxu1 %v5636_v2 }
 0x279   : > { %5192 = vmatprep.subr.bf16.mxu0 %v5636_v2  ;;  %v2885_v35 = vsel %vm1716_vm2, %v2875_v29, %v2884_v37 }
 0x27b   : > { %5225 = vmatpush3.bf16.msra.mxu1 %v5573_v58  ;;  %5153 = vmatmul.mubr.bf16.gmra.mrb[44].mxu0 %v2616_v38 }
 0x27c   : > { %5193 = vmatpush3.bf16.msra.mxu0 %v5574_v39  ;;  %5226 = vmatprep.subr.bf16.mxu1 %v5636_v2 }
 0x27d   : > { %5194 = vmatprep.subr.bf16.mxu0 %v5636_v2  ;;  %5200 = vmatprep.mubr.msk.bf16.mxu0 %vm5637_vm6, %v5636_v2 }
 0x27f   : > { %5227 = vmatpush3.bf16.msra.mxu1 %v5575_v9 }
 0x280   : > { %5195 = vmatpush3.bf16.msra.mxu0 %v5576_v59  ;;  %5260 = vmatprep.subr.bf16.mxu1 %v5636_v2 }
 0x281   : > { %5196 = vmatprep.subr.bf16.mxu0 %v5636_v2 }
 0x282   : > { %5229 = vmatmul.mubr.bf16.vlgmr.msra.gmra.mrb[60].mxu1 %v3025_v6 }
 0x283   : > { %5232 = vmatprep.mubr.msk.bf16.mxu1 %vm5637_vm6, %v5636_v2  ;;  %5261 = vmatpush3.bf16.msra.mxu1 %v5579_v40 }
 0x284   : > { %5197 = vmatpush3.bf16.msra.mxu0 %v5577_v48  ;;  %5262 = vmatprep.subr.bf16.mxu1 %v5636_v2 }
 0x285   : > { %5198 = vmatprep.subr.bf16.mxu0 %v5636_v2 }
 0x287   : > { %5263 = vmatpush3.bf16.msra.mxu1 %v5580_v41 }
 0x288   : > { %5199 = vmatpush3.bf16.msra.mxu0 %v5578_v16  ;;  %5264 = vmatprep.subr.bf16.mxu1 %v5636_v2 }
 0x289   : > { %5240 = vmatprep.subr.bf16.mxu0 %v5636_v2 }
 0x28a   : > { %5233 = vmatmul.mubr.bf16.gmra.mrb[64].mxu1 %v3027_v4 }
 0x28b   : > { %5201 = vmatmul.mubr.bf16.vlgmr.msra.gmra.mrb[48].mxu0 %v2867_v19  ;;  %5236 = vmatprep.mubr.msk.bf16.mxu1 %vm5637_vm6, %v5636_v2 }
 0x28c   : > { %5204 = vmatprep.mubr.msk.bf16.mxu0 %vm5637_vm6, %v5636_v2  ;;  %5265 = vmatpush3.bf16.msra.mxu1 %v5582_v42 }
 0x28d   : > { %5266 = vmatprep.subr.bf16.mxu1 %v5636_v2  ;;  %5241 = vmatpush3.bf16.msra.mxu0 %v5581_v15 }
 0x28e   : > { %5242 = vmatprep.subr.bf16.mxu0 %v5636_v2 }
 0x290   : > { %5267 = vmatpush3.bf16.msra.mxu1 %v5584_v43 }
 0x291   : > { %5300 = vmatprep.subr.bf16.mxu1 %v5636_v2  ;;  %5243 = vmatpush3.bf16.msra.mxu0 %v5583_v46 }
 0x292   : > { %5237 = vmatmul.mubr.bf16.gmra.mrb[68].mxu1 %v3029_v30  ;;  %5244 = vmatprep.subr.bf16.mxu0 %v5636_v2 }
 0x293   : > { %5205 = vmatmul.mubr.bf16.gmra.mrb[52].mxu0 %v2876_v56  ;;  %5268 = vmatprep.mubr.msk.bf16.mxu1 %vm5637_vm6, %v5636_v2 }
 0x294   : > { %5208 = vmatprep.mubr.msk.bf16.mxu0 %vm5637_vm6, %v5636_v2 }
 0x295   : > { %5245 = vmatpush3.bf16.msra.mxu0 %v5585_v47 }
 0x296   : > { %5246 = vmatprep.subr.bf16.mxu0 %v5636_v2 }
 0x299   : > { %5247 = vmatpush3.bf16.msra.mxu0 %v5586_v49 }
 0x29a   : > { %5280 = vmatprep.subr.bf16.mxu0 %v5636_v2 }
 0x29b   : > { %5209 = vmatmul.mubr.bf16.gmra.mrb[56].mxu0 %v2885_v35 }
 0x29c   : > { %5248 = vmatprep.mubr.msk.bf16.mxu0 %vm5637_vm6, %v5636_v2 }
 0x335   : > { %v2807_v50 = vpop.f32.mrb[48].mxu1 }
 0x336   : > { %v5174_v51 = vpop.f32.mrb[49].mxu1 }
 0x337   : > { %v2810_v57 = vpop.f32.mrb[50].mxu1 }
 0x338   : > { %v5175_v18 = vpop.f32.mrb[51].mxu1 }
 0x33d   : > { %v2815_v21 = vpop.f32.mrb[52].mxu1 }
 0x33e   : > { %v2702_v0 = vpop.f32.mrb[36].mxu0  ;;  %v5178_v52 = vpop.f32.mrb[53].mxu1 }
 0x33f   : > { %v2808_v53 = vadd.f32 %v2807_v50, %v2702_v0  ;;  %v5146_v14 = vpop.f32.mrb[37].mxu0  ;;  %v2818_v33 = vpop.f32.mrb[54].mxu1 }
 0x340   : > { %v2705_v34 = vpop.f32.mrb[38].mxu0  ;;  %v5179_v22 = vpop.f32.mrb[55].mxu1 }
 0x341   : > { %v2811_v3 = vadd.f32 %v2810_v57, %v2705_v34  ;;  %v5147_v31 = vpop.f32.mrb[39].mxu0 }
 0x345   : > { %v2823_v54 = vpop.f32.mrb[56].mxu1 }
 0x346   : > { %v2710_v55 = vpop.f32.mrb[40].mxu0  ;;  %v5182_v58 = vpop.f32.mrb[57].mxu1 }
 0x347   : > { %v2816_v39 = vadd.f32 %v2815_v21, %v2710_v55  ;;  %v5150_v38 = vpop.f32.mrb[41].mxu0  ;;  %v2826_v9 = vpop.f32.mrb[58].mxu1 }
 0x348   : > { %v2713_v59 = vpop.f32.mrb[42].mxu0  ;;  %v5183_v28 = vpop.f32.mrb[59].mxu1 }
 0x349   : > { %v2819_v60 = vadd.f32 %v2818_v33, %v2713_v59  ;;  %v5151_v61 = vpop.f32.mrb[43].mxu0  ;;  %v5587_v33 = vld [vmem:[%s6768_s5 + $0x60] sm:$0xff]  }
 0x34a   : > { %v5590_v61 = vld [vmem:[%s6768_s5 + $0x70] sm:$0xff]  }
 0x34e   : > { %v2718_v62 = vpop.f32.mrb[44].mxu0 }
 0x34f   : > { %v2824_v48 = vadd.f32 %v2823_v54, %v2718_v62  ;;  %v5154_v63 = vpop.f32.mrb[45].mxu0 }
 0x350   : > { %v2721_v1 = vpop.f32.mrb[46].mxu0 }
 0x351   : > { %v2827_v6 = vadd.f32 %v2826_v9, %v2721_v1  ;;  %v5155_v8 = vpop.f32.mrb[47].mxu0 }
 0x355   : > { %v3115_v25 = vpop.f32.mrb[60].mxu1 }
 0x356   : > { %v5230_v16 = vpop.f32.mrb[61].mxu1 }
 0x357   : > { %v3118_v5 = vpop.f32.mrb[62].mxu1 }
 0x358   : > { %v5231_v10 = vpop.f32.mrb[63].mxu1 }
 0x359   : > { %v5588_v10 = vld [vmem:[%s6768_s5 + $0x40] sm:$0xff]  }
 0x35d   : > { %v3123_v17 = vpop.f32.mrb[64].mxu1 }
 0x35e   : > { %v2971_v7 = vpop.f32.mrb[48].mxu0  ;;  %v5234_v11 = vpop.f32.mrb[65].mxu1 }
 0x35f   : > { %v2994_v4 = vadd.f32 %v2971_v7, %v2808_v53  ;;  %v5202_v19 = vpop.f32.mrb[49].mxu0  ;;  %v3126_v12 = vpop.f32.mrb[66].mxu1 }
 0x360   : > { %v2974_v24 = vpop.f32.mrb[50].mxu0  ;;  %v5235_v23 = vpop.f32.mrb[67].mxu1  ;;  %v5591_v19 = vld [vmem:[%s6768_s5 + $0x48] sm:$0xff]  }
 0x361   : > { %v3138_v27 = vadd.f32 %v3115_v25, %v2994_v4  ;;  %v2995_v29 = vadd.f32 %v2974_v24, %v2811_v3  ;;  %v5203_v26 = vpop.f32.mrb[51].mxu0  ;;  %v5592_v25 = vld [vmem:[%s6768_s5 + $0x78] sm:$0xff]  }
 0x363   : > { %v3150_v13 = vadd.f32 %v4553_v20, %v3138_v27  ;;  %v3139_v30 = vadd.f32 %v3118_v5, %v2995_v29 }
 0x365   : > { %v3151_v56 = vadd.f32 %v4553_v20, %v3139_v30  ;;  %v3131_v32 = vpop.f32.mrb[68].mxu1  ;;  %v3156_v35 = vmax.f32 %v3150_v13, 0.0 }
 0x366   : > { %v2979_v36 = vpop.f32.mrb[52].mxu0  ;;  %v5238_v37 = vpop.f32.mrb[69].mxu1 }
 0x367   : > { %v3157_v40 = vmax.f32 %v3151_v56, 0.0  ;;  %v2996_v41 = vadd.f32 %v2979_v36, %v2816_v39  ;;  %v5206_v42 = vpop.f32.mrb[53].mxu0  ;;  %v3134_v43 = vpop.f32.mrb[70].mxu1  ;;  %v5589_v39 = vld [vmem:[%s6768_s5 + $0x68] sm:$0xff]  }
 0x368   : > { %v2982_v15 = vpop.f32.mrb[54].mxu0  ;;  %v5239_v44 = vpop.f32.mrb[71].mxu1 }
 0x369   : > { %v3162_v45 = vpack.c.bf16 %v3157_v40, %v3156_v35  ;;  %v3140_v46 = vadd.f32 %v3123_v17, %v2996_v41  ;;  %v2997_v47 = vadd.f32 %v2982_v15, %v2819_v60  ;;  %v5207_v49 = vpop.f32.mrb[55].mxu0  ;;  %v3169_v60 = vld [vmem:[#allocation3 + $0x10] sm:$0xff] }
 0x36a   : > { %v5593_v41 = vld [vmem:[%s6768_s5 + $0x50] sm:$0xff]   ;;  %v5594_v49 = vld [vmem:[%s6768_s5 + $0x58] sm:$0xff]  }
 0x36b   : > { %3165 = vst.msk [vmem:[#allocation3] sm:$0xff] %vm323_vm13, %v3162_v45  ;;  %v3152_v50 = vadd.f32 %v4553_v20, %v3140_v46  ;;  %v3141_v51 = vadd.f32 %v3126_v12, %v2997_v47  ;;  %v5595_v47 = vld [vmem:[%s6768_s5 + $0xa0] sm:$0xff]  }
 0x36d   : > { %v3153_v57 = vadd.f32 %v4553_v20, %v3141_v51  ;;  %v3158_v21 = vmax.f32 %v3152_v50, 0.0 }
 0x36e   : > { %v2987_v18 = vpop.f32.mrb[56].mxu0 }
 0x36f   : > { %v3159_v0 = vmax.f32 %v3153_v57, 0.0  ;;  %v2998_v52 = vadd.f32 %v2987_v18, %v2824_v48  ;;  %v5210_v53 = vpop.f32.mrb[57].mxu0 }
 0x370   : > { %v2990_v14 = vpop.f32.mrb[58].mxu0  ;;  %v5598_v53 = vld [vmem:[%s6768_s5 + $0xb0] sm:$0xff]  }
 0x371   : > { %v3163_v34 = vpack.c.bf16 %v3159_v0, %v3158_v21  ;;  %v3142_v22 = vadd.f32 %v3131_v32, %v2998_v52  ;;  %v2999_v3 = vadd.f32 %v2990_v14, %v2827_v6  ;;  %v5211_v31 = vpop.f32.mrb[59].mxu0  ;;  %v5597_v21 = vld [vmem:[%s6768_s5 + $0xa8] sm:$0xff]  }
 0x372   : > { %v3172_v54 = vld [vmem:[#allocation3] sm:$0xff] }
 0x373   : > { %3166 = vst.msk [vmem:[#allocation3 + $0x8] sm:$0xff] %vm323_vm13, %v3163_v34  ;;  %v3154_v55 = vadd.f32 %v4553_v20, %v3142_v22  ;;  %v3143_v58 = vadd.f32 %v3134_v43, %v2999_v3  ;;  %5269 = vmatmul.mubr.msk.bf16.vlgmr.msra.gmra.mrb[72].mxu1 %vm323_vm13, %v3172_v54  ;;  %v3195_v9 = vshll.u32 %v3172_v54, 16  ;;  %v3193_v6 = vshrl.u32 %v3172_v54, 16  ;;  %v3504_v17 = vld [vmem:[#allocation3] sm:$0xfc]  ;;  %v5600_v22 = vld [vmem:[%s6768_s5 + $0xb8] sm:$0xff]  }
 0x374   : > { %5272 = vmatprep.mubr.msk.bf16.mxu1 %vm5637_vm6, %v5636_v2  ;;  %5301 = vmatpush3.bf16.msra.mxu1 %v5587_v33  ;;  %v3516_v12 = vshrl.u32 %v3504_v17, 16  ;;  %v3390_v33 = vld [vmem:[#allocation3] sm:$0xfe] }
 0x375   : > { %v3155_v38 = vadd.f32 %v4553_v20, %v3143_v58  ;;  %5302 = vmatprep.subr.bf16.mxu1 %v5636_v2  ;;  %v3160_v59 = vmax.f32 %v3154_v55, 0.0  ;;  %v3197_v48 = vrot.slane %v3195_v9, 1  ;;  %v3519_v20 = vshll.u32 %v3504_v17, 16  ;;  %v5596_v31 = vld [vmem:[%s6768_s5 + $0x80] sm:$0xff]   ;;  %v5599_v9 = vld [vmem:[%s6768_s5 + $0x88] sm:$0xff]  }
 0x376   : > { %v3518_v36 = vrot.slane %v3516_v12, 2  ;;  %v3405_v3 = vrot.slane %v3390_v33, 1  ;;  %v6597_v54 = vld [vmem:[#allocation3] sm:$0xf8] }
 0x377   : > { %v3161_v28 = vmax.f32 %v3155_v38, 0.0  ;;  %v3198_v16 = vor.u32 %v3197_v48, %v3193_v6  ;;  %v3521_v37 = vrot.slane %v3519_v20, 3  ;;  %v3756_v38 = vshll.u32 %v6597_v54, 16  ;;  %v5601_v6 = vld [vmem:[%s6768_s5 + $0x90] sm:$0xff]  }
 0x378   : > { %5303 = vmatpush3.bf16.msra.mxu1 %v5589_v39  ;;  %v3753_v39 = vshrl.u32 %v6597_v54, 16 }
 0x379   : > { %v3164_v62 = vpack.c.bf16 %v3161_v28, %v3160_v59  ;;  %5304 = vmatprep.subr.bf16.mxu1 %v5636_v2  ;;  %v3522_v46 = vor.u32 %v3521_v37, %v3518_v36  ;;  %v3758_v48 = vrot.slane %v3756_v38, 4  ;;  %v5608_v37 = vld [vmem:[%s6768_s5 + $0xf8] sm:$0xff]  }
 0x37a   : > { %v6498_v63 = vld [vmem:[#allocation3 + $0x8] sm:$0xff] }
 0x37b   : > { %v6500_v1 = vsel %vm3168_vm3, %v3164_v62, %v3169_v60  ;;  %v6503_v8 = vshll.u32 %v6498_v63, 16  ;;  %5273 = vmatmul.mubr.msk.bf16.gmra.mrb[76].mxu1 %vm323_vm13, %v6498_v63  ;;  %v6520_v11 = vshrl.u32 %v6498_v63, 16  ;;  %v3882_v4 = vrot.slane %v6498_v63, 5 }
 0x37c   : > { %3171 = vst [vmem:[#allocation3 + $0x10] sm:$0xff] %v6500_v1  ;;  %5276 = vmatprep.mubr.msk.bf16.mxu1 %vm5637_vm6, %v5636_v2  ;;  %5305 = vmatpush3.bf16.msra.mxu1 %v5590_v61  ;;  %v3884_v24 = vrot.slane %v6500_v1, 5  ;;  %v4124_v56 = vrot.slane %v6498_v63, 6  ;;  %v4126_v32 = vrot.slane %v6500_v1, 6  ;;  %v3406_v34 = vrot.slane %v6498_v63, 1 }
 0x37d   : > { %v3202_v5 = vrot.slane %v6503_v8, 1  ;;  %5306 = vmatprep.subr.bf16.mxu1 %v5636_v2  ;;  %v3523_v27 = vrot.slane %v6520_v11, 2  ;;  %v3524_v29 = vrot.slane %v6503_v8, 3  ;;  %v3760_v59 = vrot.slane %v6520_v11, 3 }
 0x37e   : > { %v6539_v26 = vsel %vm3880_vm5, %v3882_v4, %v3884_v24  ;;  %v6557_v45 = vsel %vm4122_vm7, %v4124_v56, %v4126_v32  ;;  %v3761_v28 = vrot.slane %v6503_v8, 4  ;;  %v3755_v62 = vrot.slane %v3753_v39, 3  ;;  %v4105_v39 = vld [vmem:[#allocation3] sm:$0xc0] }
 0x37f   : > { %v3203_v7 = vsel %vm895_vm1, %v3198_v16, %v3202_v5  ;;  %v3206_v40 = vor.u32 %v6520_v11, %v3202_v5  ;;  %v3525_v42 = vor.u32 %v3524_v29, %v3523_v27  ;;  %v5605_v27 = vld [vmem:[%s6768_s5 + $0xe8] sm:$0xff]   ;;  %v3644_v36 = vrot.slane %v6498_v63, 3 }
 0x380   : > { %5249 = vmatmul.mubr.msk.bf16.vlgmr.msra.gmra.mrb[60].mxu0 %vm323_vm13, %v3203_v7  ;;  %5307 = vmatpush3.bf16.msra.mxu1 %v5592_v25  ;;  %v3762_v25 = vor.u32 %v3761_v28, %v3760_v59  ;;  %v3759_v17 = vor.u32 %v3758_v48, %v3755_v62  ;;  %v5603_v7 = vld [vmem:[%s6768_s5 + $0xe0] sm:$0xff]  }
 0x381   : > { %5281 = vmatpush3.bf16.msra.mxu0 %v5588_v10  ;;  %5252 = vmatprep.mubr.msk.bf16.mxu0 %vm5637_vm6, %v5636_v2  ;;  %v3526_v50 = vsel %vm1716_vm2, %v3522_v46, %v3525_v42  ;;  %v3998_v46 = vrot.slane %v6520_v11, 5  ;;  %v4003_v11 = vshrl.u32 %v6500_v1, 16 }
 0x382   : > { %5282 = vmatprep.subr.bf16.mxu0 %v5636_v2  ;;  %5340 = vmatprep.subr.bf16.mxu1 %v5636_v2 }
 0x383   : > { %v3174_v23 = vld [vmem:[#allocation3 + $0x10] sm:$0x7] }
 0x384   : > { %v3208_v13 = vshll.u32 %v3174_v23, 16  ;;  %5277 = vmatmul.mubr.msk.bf16.gmra.mrb[80].mxu1 %vm323_vm13, %v3174_v23  ;;  %v3505_v30 = vld [vmem:[#allocation3 + $0x10] sm:$0x1f]  ;;  %v3212_v18 = vshrl.u32 %v3174_v23, 16 }
 0x385   : > { %5283 = vmatpush3.bf16.msra.mxu0 %v5591_v19  ;;  %5308 = vmatprep.mubr.msk.bf16.mxu1 %vm5637_vm6, %v5636_v2  ;;  %v3528_v43 = vshrl.u32 %v3505_v30, 16  ;;  %v3531_v15 = vshll.u32 %v3505_v30, 16  ;;  %v3391_v58 = vld [vmem:[#allocation3 + $0x10] sm:$0xf]  ;;  %v5602_v19 = vld [vmem:[%s6768_s5 + $0x98] sm:$0xff]  }
 0x386   : > { %v3210_v35 = vrot.slane %v3208_v13, 1  ;;  %5284 = vmatprep.subr.bf16.mxu0 %v5636_v2  ;;  %v3408_v60 = vrot.slane %v3391_v58, 1  ;;  %v6613_v61 = vld [vmem:[#allocation3 + $0x10] sm:$0x3f] }
 0x387   : > { %v3530_v51 = vrot.slane %v3528_v43, 2  ;;  %v3533_v57 = vrot.slane %v3531_v15, 3  ;;  %v3765_v16 = vshrl.u32 %v6613_v61, 16  ;;  %v3768_v5 = vshll.u32 %v6613_v61, 16  ;;  %v5606_v13 = vld [vmem:[%s6768_s5 + $0xf0] sm:$0xff]  }
 0x388   : > { %v3211_v44 = vsel %vm895_vm1, %v3206_v40, %v3210_v35  ;;  %v3214_v0 = vor.u32 %v3212_v18, %v3210_v35  ;;  %vm3404_vm1 = vcmask 1046528   ;;  %v3643_v35 = vrot.slane %v6597_v54, 3  ;;  %v5604_v40 = vld [vmem:[%s6768_s5 + $0xc0] sm:$0xff]   ;;  %v5613_v58 = vld [vmem:[%s6768_s5 + $0x110] sm:$0xff]  }
 0x389   : > { %5253 = vmatmul.mubr.msk.bf16.gmra.mrb[64].mxu0 %vm323_vm13, %v3211_v44  ;;  %v3534_v52 = vor.u32 %v3533_v57, %v3530_v51  ;;  %v3407_v55 = vsel %vm3404_vm1, %v3405_v3, %v3406_v34  ;;  %v3409_v10 = vsel %vm3404_vm1, %v3406_v34, %v3408_v60  ;;  %v3767_v20 = vrot.slane %v3765_v16, 3  ;;  %v5607_v44 = vld [vmem:[%s6768_s5 + $0xc8] sm:$0xff]   ;;  %v5609_v57 = vld [vmem:[%s6768_s5 + $0xd0] sm:$0xff]  }
 0x38a   : > { %5285 = vmatpush3.bf16.msra.mxu0 %v5593_v41  ;;  %5256 = vmatprep.mubr.msk.bf16.mxu0 %vm5637_vm6, %v5636_v2  ;;  %v3770_v23 = vrot.slane %v3768_v5, 4  ;;  %v3867_v41 = vld [vmem:[#allocation3] sm:$0xe0] }
 0x38b   : > { %5286 = vmatprep.subr.bf16.mxu0 %v5636_v2  ;;  %v3535_v14 = vsel %vm1716_vm2, %v3525_v42, %v3534_v52  ;;  %vm3751_vm2 = vsmask.f32 4352  ;;  %v3645_v42 = vsel %vm2427_vm4, %v3643_v35, %v3644_v36  ;;  %v3991_v43 = vshrl.u32 %v3867_v41, 16 }
 0x38c   : > { %5309 = vmatmul.mubr.msk.bf16.vlgmr.msra.gmra.mrb[84].mxu1 %vm323_vm13, %v3526_v50  ;;  %v3763_v12 = vsel %vm3751_vm2, %v3759_v17, %v3762_v25  ;;  %v3771_v29 = vor.u32 %v3770_v23, %v3767_v20  ;;  %v3994_v15 = vshll.u32 %v3867_v41, 16  ;;  %v3881_v3 = vrot.slane %v3867_v41, 5 }
 0x38d   : > { %5312 = vmatprep.mubr.msk.bf16.mxu1 %vm5637_vm6, %v5636_v2  ;;  %5341 = vmatpush3.bf16.msra.mxu1 %v5595_v47  ;;  %v3999_v47 = vrot.slane %v6503_v8, 6  ;;  %v3993_v50 = vrot.slane %v3991_v43, 5  ;;  %v4006_v8 = vshll.u32 %v6500_v1, 16 }
 0x38e   : > { %5287 = vmatpush3.bf16.msra.mxu0 %v5594_v49  ;;  %5342 = vmatprep.subr.bf16.mxu1 %v5636_v2  ;;  %v3772_v30 = vsel %vm3751_vm2, %v3762_v25, %v3771_v29  ;;  %v3646_v49 = vrot.slane %v6613_v61, 3  ;;  %v3996_v51 = vrot.slane %v3994_v15, 6  ;;  %v3883_v54 = vsel %vm3880_vm5, %v3881_v3, %v3882_v4  ;;  %v5614_v4 = vld [vmem:[%s6768_s5 + $0x118] sm:$0xff]  }
 0x38f   : > { %5320 = vmatprep.subr.bf16.mxu0 %v5636_v2  ;;  %v4000_v18 = vor.u32 %v3999_v47, %v3998_v46  ;;  %v4008_v33 = vrot.slane %v4006_v8, 6 }
 0x391   : > { %5257 = vmatmul.mubr.msk.bf16.gmra.mrb[68].mxu0 %vm323_vm13, %v3214_v0  ;;  %5343 = vmatpush3.bf16.msra.mxu1 %v5597_v21  ;;  %v3647_v21 = vsel %vm2427_vm4, %v3644_v36, %v3646_v49  ;;  %v3997_v0 = vor.u32 %v3996_v51, %v3993_v50  ;;  %vm4244_vm4 = vcmask 520192  }
 0x392   : > { %5288 = vmatprep.mubr.msk.bf16.mxu0 %vm5637_vm6, %v5636_v2  ;;  %5344 = vmatprep.subr.bf16.mxu1 %v5636_v2 }
 0x394   : > { %5313 = vmatmul.mubr.msk.bf16.gmra.mrb[88].mxu1 %vm323_vm13, %v3535_v14  ;;  %v4005_v14 = vrot.slane %v4003_v11, 5 }
 0x395   : > { %5316 = vmatprep.mubr.msk.bf16.mxu1 %vm5637_vm6, %v5636_v2  ;;  %5345 = vmatpush3.bf16.msra.mxu1 %v5598_v53  ;;  %v4001_v53 = vsel %vm3989_vm8, %v3997_v0, %v4000_v18 }
 0x396   : > { %5346 = vmatprep.subr.bf16.mxu1 %v5636_v2  ;;  %v4009_v34 = vor.u32 %v4008_v33, %v4005_v14 }
 0x399   : > { %5289 = vmatmul.mubr.msk.bf16.vlgmr.msra.gmra.mrb[72].mxu0 %vm323_vm13, %v3407_v55  ;;  %5347 = vmatpush3.bf16.msra.mxu1 %v5600_v22  ;;  %v4010_v22 = vsel %vm3989_vm8, %v4000_v18, %v4009_v34  ;;  %v5612_v55 = vld [vmem:[%s6768_s5 + $0x108] sm:$0xff]  }
 0x39a   : > { %5321 = vmatpush3.bf16.msra.mxu0 %v5596_v31  ;;  %5292 = vmatprep.mubr.msk.bf16.mxu0 %vm5637_vm6, %v5636_v2  ;;  %v5611_v31 = vld [vmem:[%s6768_s5 + $0x100] sm:$0xff]  }
 0x39b   : > { %5322 = vmatprep.subr.bf16.mxu0 %v5636_v2  ;;  %5380 = vmatprep.subr.bf16.mxu1 %v5636_v2 }
 0x39c   : > { %5317 = vmatmul.mubr.msk.bf16.gmra.mrb[92].mxu1 %vm323_vm13, %v3534_v52  ;;  %v5610_v52 = vld [vmem:[%s6768_s5 + $0xd8] sm:$0xff]  }
 0x39d   : > { %5348 = vmatprep.mubr.msk.bf16.mxu1 %vm5637_vm6, %v5636_v2 }
 0x39e   : > { %5323 = vmatpush3.bf16.msra.mxu0 %v5599_v9  ;;  %v4108_v9 = vld [vmem:[#allocation3 + $0x18] sm:$0x1] }
 0x39f   : > { %5324 = vmatprep.subr.bf16.mxu0 %v5636_v2 }
 0x3a1   : > { %5293 = vmatmul.mubr.msk.bf16.gmra.mrb[76].mxu0 %vm323_vm13, %v3409_v10 }
 0x3a2   : > { %5325 = vmatpush3.bf16.msra.mxu0 %v5601_v6  ;;  %5296 = vmatprep.mubr.msk.bf16.mxu0 %vm5637_vm6, %v5636_v2 }
 0x3a3   : > { %5326 = vmatprep.subr.bf16.mxu0 %v5636_v2 }
 0x3a4   : > { %5349 = vmatmul.mubr.msk.bf16.vlgmr.msra.gmra.mrb[96].mxu1 %vm323_vm13, %v3763_v12 }
 0x3a5   : > { %5352 = vmatprep.mubr.msk.bf16.mxu1 %vm5637_vm6, %v5636_v2  ;;  %5381 = vmatpush3.bf16.msra.mxu1 %v5603_v7 }
 0x3a6   : > { %5327 = vmatpush3.bf16.msra.mxu0 %v5602_v19  ;;  %5382 = vmatprep.subr.bf16.mxu1 %v5636_v2 }
 0x3a7   : > { %5360 = vmatprep.subr.bf16.mxu0 %v5636_v2 }
 0x3a9   : > { %5297 = vmatmul.mubr.msk.bf16.gmra.mrb[80].mxu0 %vm323_vm13, %v3408_v60  ;;  %5383 = vmatpush3.bf16.msra.mxu1 %v5605_v27 }
 0x3aa   : > { %5328 = vmatprep.mubr.msk.bf16.mxu0 %vm5637_vm6, %v5636_v2  ;;  %5384 = vmatprep.subr.bf16.mxu1 %v5636_v2 }
 0x3ac   : > { %5353 = vmatmul.mubr.msk.bf16.gmra.mrb[100].mxu1 %vm323_vm13, %v3772_v30 }
 0x3ad   : > { %5356 = vmatprep.mubr.msk.bf16.mxu1 %vm5637_vm6, %v5636_v2  ;;  %5385 = vmatpush3.bf16.msra.mxu1 %v5606_v13 }
 0x3ae   : > { %5386 = vmatprep.subr.bf16.mxu1 %v5636_v2 }
 0x3b1   : > { %5329 = vmatmul.mubr.msk.bf16.vlgmr.msra.gmra.mrb[84].mxu0 %vm323_vm13, %v3645_v42  ;;  %5387 = vmatpush3.bf16.msra.mxu1 %v5608_v37 }
 0x3b2   : > { %5361 = vmatpush3.bf16.msra.mxu0 %v5604_v40  ;;  %5332 = vmatprep.mubr.msk.bf16.mxu0 %vm5637_vm6, %v5636_v2 }
 0x3b3   : > { %5362 = vmatprep.subr.bf16.mxu0 %v5636_v2 }
 0x3b4   : > { %5357 = vmatmul.mubr.msk.bf16.gmra.mrb[104].mxu1 %vm323_vm13, %v3771_v29 }
 0x3b5   : > { %5388 = vmatprep.mubr.msk.bf16.mxu1 %vm5637_vm6, %v5636_v2 }
 0x3b6   : > { %5363 = vmatpush3.bf16.msra.mxu0 %v5607_v44 }
 0x3b7   : > { %5364 = vmatprep.subr.bf16.mxu0 %v5636_v2 }
 0x3b9   : > { %5333 = vmatmul.mubr.msk.bf16.gmra.mrb[88].mxu0 %vm323_vm13, %v3647_v21 }
 0x3ba   : > { %5365 = vmatpush3.bf16.msra.mxu0 %v5609_v57  ;;  %5336 = vmatprep.mubr.msk.bf16.mxu0 %vm5637_vm6, %v5636_v2 }
 0x3bb   : > { %5366 = vmatprep.subr.bf16.mxu0 %v5636_v2 }
 0x3bc   : > { %5389 = vmatmul.mubr.msk.bf16.vlgmr.msra.gmra.mrb[108].mxu1 %vm323_vm13, %v4001_v53 }
 0x3bd   : > { %5392 = vmatprep.mubr.msk.bf16.mxu1 %vm5637_vm6, %v5636_v2 }
 0x3be   : > { %5367 = vmatpush3.bf16.msra.mxu0 %v5610_v52 }
 0x3bf   : > { %5400 = vmatprep.subr.bf16.mxu0 %v5636_v2 }
 0x3c1   : > { %5337 = vmatmul.mubr.msk.bf16.gmra.mrb[92].mxu0 %vm323_vm13, %v3646_v49 }
 0x3c2   : > { %5368 = vmatprep.mubr.msk.bf16.mxu0 %vm5637_vm6, %v5636_v2 }
 0x3c4   : > { %5393 = vmatmul.mubr.msk.bf16.gmra.mrb[112].mxu1 %vm323_vm13, %v4010_v22 }
 0x3c5   : > { %5396 = vmatprep.mubr.msk.bf16.mxu1 %vm5637_vm6, %v5636_v2 }
 0x3c9   : > { %5369 = vmatmul.mubr.msk.bf16.vlgmr.msra.gmra.mrb[96].mxu0 %vm323_vm13, %v3883_v54 }
 0x3ca   : > { %5401 = vmatpush3.bf16.msra.mxu0 %v5611_v31  ;;  %5372 = vmatprep.mubr.msk.bf16.mxu0 %vm5637_vm6, %v5636_v2 }
 0x3cb   : > { %5402 = vmatprep.subr.bf16.mxu0 %v5636_v2 }
 0x3cc   : > { %5397 = vmatmul.mubr.msk.bf16.gmra.mrb[116].mxu1 %vm323_vm13, %v4009_v34 }
 0x3ce   : > { %5403 = vmatpush3.bf16.msra.mxu0 %v5612_v55 }
 0x3cf   : > { %5404 = vmatprep.subr.bf16.mxu0 %v5636_v2 }
 0x3d1   : > { %5373 = vmatmul.mubr.msk.bf16.gmra.mrb[100].mxu0 %vm323_vm13, %v6539_v26  ;;  %v4123_v26 = vrot.slane %v4105_v39, 6 }
 0x3d2   : > { %5405 = vmatpush3.bf16.msra.mxu0 %v5613_v58  ;;  %5376 = vmatprep.mubr.msk.bf16.mxu0 %vm5637_vm6, %v5636_v2 }
 0x3d3   : > { %5406 = vmatprep.subr.bf16.mxu0 %v5636_v2  ;;  %v4125_v38 = vsel %vm4122_vm7, %v4123_v26, %v4124_v56 }
 0x3d6   : > { %5407 = vmatpush3.bf16.msra.mxu0 %v5614_v4 }
 0x3d9   : > { %5377 = vmatmul.mubr.msk.bf16.gmra.mrb[104].mxu0 %vm323_vm13, %v3884_v24  ;;  %v4128_v24 = vrot.slane %v4108_v9, 6 }
 0x3da   : > { %5408 = vmatprep.mubr.msk.bf16.mxu0 %vm5637_vm6, %v5636_v2 }
 0x3db   : > { %v4129_v59 = vsel %vm4122_vm7, %v4126_v32, %v4128_v24 }
 0x3e1   : > { %5409 = vmatmul.mubr.msk.bf16.vlgmr.msra.gmra.mrb[108].mxu0 %vm323_vm13, %v4125_v38 }
 0x3e2   : > { %5412 = vmatprep.mubr.msk.bf16.mxu0 %vm5637_vm6, %v5636_v2 }
 0x3e9   : > { %5413 = vmatmul.mubr.msk.bf16.gmra.mrb[112].mxu0 %vm323_vm13, %v6557_v45 }
 0x3ea   : > { %5416 = vmatprep.mubr.msk.bf16.mxu0 %vm5637_vm6, %v5636_v2 }
 0x3f1   : > { %5417 = vmatmul.mubr.msk.bf16.gmra.mrb[116].mxu0 %vm323_vm13, %v4129_v59 }
 0x446   : > { %v3368_v63 = vpop.f32.mrb[72].mxu1 }
 0x447   : > { %v5270_v56 = vpop.f32.mrb[73].mxu1 }
 0x448   : > { %v3371_v28 = vpop.f32.mrb[74].mxu1 }
 0x449   : > { %v5271_v60 = vpop.f32.mrb[75].mxu1 }
 0x44e   : > { %v3376_v61 = vpop.f32.mrb[76].mxu1 }
 0x44f   : > { %v5274_v62 = vpop.f32.mrb[77].mxu1 }
 0x450   : > { %v3379_v48 = vpop.f32.mrb[78].mxu1 }
 0x451   : > { %v5275_v6 = vpop.f32.mrb[79].mxu1 }
 0x453   : > { %v3282_v45 = vpop.f32.mrb[60].mxu0 }
 0x454   : > { %v3369_v25 = vadd.f32 %v3368_v63, %v3282_v45  ;;  %v5250_v16 = vpop.f32.mrb[61].mxu0 }
 0x455   : > { %v3285_v5 = vpop.f32.mrb[62].mxu0 }
 0x456   : > { %v3372_v2 = vadd.f32 %v3371_v28, %v3285_v5  ;;  %v5251_v10 = vpop.f32.mrb[63].mxu0 }
 0x457   : > { %v3384_v17 = vpop.f32.mrb[80].mxu1 }
 0x458   : > { %v5278_v1 = vpop.f32.mrb[81].mxu1 }
 0x459   : > { %v3387_v7 = vpop.f32.mrb[82].mxu1 }
 0x45a   : > { %v5279_v32 = vpop.f32.mrb[83].mxu1 }
 0x45c   : > { %v3290_v19 = vpop.f32.mrb[64].mxu0 }
 0x45d   : > { %v3377_v12 = vadd.f32 %v3376_v61, %v3290_v19  ;;  %v5254_v20 = vpop.f32.mrb[65].mxu0 }
 0x45e   : > { %v3293_v23 = vpop.f32.mrb[66].mxu0 }
 0x45f   : > { %v3380_v27 = vadd.f32 %v3379_v48, %v3293_v23  ;;  %v5255_v29 = vpop.f32.mrb[67].mxu0  ;;  %v3603_v13 = vpop.f32.mrb[84].mxu1 }
 0x460   : > { %v5310_v30 = vpop.f32.mrb[85].mxu1 }
 0x461   : > { %v3606_v36 = vpop.f32.mrb[86].mxu1 }
 0x462   : > { %v5311_v37 = vpop.f32.mrb[87].mxu1 }
 0x464   : > { %v3298_v35 = vpop.f32.mrb[68].mxu0 }
 0x465   : > { %v3385_v40 = vadd.f32 %v3384_v17, %v3298_v35  ;;  %v5258_v41 = vpop.f32.mrb[69].mxu0 }
 0x466   : > { %v3301_v42 = vpop.f32.mrb[70].mxu0 }
 0x467   : > { %v5259_v43 = vpop.f32.mrb[71].mxu0  ;;  %v3611_v15 = vpop.f32.mrb[88].mxu1 }
 0x468   : > { %v5314_v44 = vpop.f32.mrb[89].mxu1 }
 0x469   : > { %v3614_v46 = vpop.f32.mrb[90].mxu1 }
 0x46a   : > { %v5315_v47 = vpop.f32.mrb[91].mxu1 }
 0x46c   : > { %v3477_v49 = vpop.f32.mrb[72].mxu0 }
 0x46d   : > { %v3499_v50 = vadd.f32 %v3477_v49, %v3369_v25  ;;  %v5290_v51 = vpop.f32.mrb[73].mxu0 }
 0x46e   : > { %v3480_v57 = vpop.f32.mrb[74].mxu0 }
 0x46f   : > { %v3500_v18 = vadd.f32 %v3480_v57, %v3372_v2  ;;  %v5291_v11 = vpop.f32.mrb[75].mxu0  ;;  %v3619_v8 = vpop.f32.mrb[92].mxu1  ;;  %v3625_v21 = vadd.f32 %v3603_v13, %v3499_v50 }
 0x470   : > { %v5318_v0 = vpop.f32.mrb[93].mxu1 }
 0x471   : > { %v3622_v52 = vpop.f32.mrb[94].mxu1  ;;  %v3626_v53 = vadd.f32 %v3606_v36, %v3500_v18 }
 0x472   : > { %v5319_v14 = vpop.f32.mrb[95].mxu1 }
 0x474   : > { %v3485_v33 = vpop.f32.mrb[76].mxu0 }
 0x475   : > { %v3501_v34 = vadd.f32 %v3485_v33, %v3377_v12  ;;  %v5294_v22 = vpop.f32.mrb[77].mxu0 }
 0x476   : > { %v3488_v3 = vpop.f32.mrb[78].mxu0 }
 0x477   : > { %v3502_v31 = vadd.f32 %v3488_v3, %v3380_v27  ;;  %v5295_v54 = vpop.f32.mrb[79].mxu0  ;;  %v3840_v55 = vpop.f32.mrb[96].mxu1  ;;  %v3627_v58 = vadd.f32 %v3611_v15, %v3501_v34 }
 0x478   : > { %v5350_v4 = vpop.f32.mrb[97].mxu1 }
 0x479   : > { %v3843_v39 = vpop.f32.mrb[98].mxu1  ;;  %v3628_v26 = vadd.f32 %v3614_v46, %v3502_v31 }
 0x47a   : > { %v5351_v38 = vpop.f32.mrb[99].mxu1 }
 0x47c   : > { %v3493_v9 = vpop.f32.mrb[80].mxu0 }
 0x47d   : > { %v3503_v24 = vadd.f32 %v3493_v9, %v3385_v40  ;;  %v5298_v59 = vpop.f32.mrb[81].mxu0 }
 0x47e   : > { %v3496_v63 = vpop.f32.mrb[82].mxu0 }
 0x47f   : > { %v5299_v56 = vpop.f32.mrb[83].mxu0  ;;  %v3848_v28 = vpop.f32.mrb[100].mxu1  ;;  %v3629_v60 = vadd.f32 %v3619_v8, %v3503_v24 }
 0x480   : > { %v5354_v61 = vpop.f32.mrb[101].mxu1 }
 0x481   : > { %v3851_v62 = vpop.f32.mrb[102].mxu1 }
 0x482   : > { %v5355_v48 = vpop.f32.mrb[103].mxu1 }
 0x484   : > { %v3715_v6 = vpop.f32.mrb[84].mxu0 }
 0x485   : > { %v3737_v45 = vadd.f32 %v3715_v6, %v3625_v21  ;;  %v5330_v25 = vpop.f32.mrb[85].mxu0 }
 0x486   : > { %v3718_v16 = vpop.f32.mrb[86].mxu0 }
 0x487   : > { %v3738_v5 = vadd.f32 %v3718_v16, %v3626_v53  ;;  %v5331_v2 = vpop.f32.mrb[87].mxu0  ;;  %v3856_v10 = vpop.f32.mrb[104].mxu1  ;;  %v3862_v17 = vadd.f32 %v3840_v55, %v3737_v45 }
 0x488   : > { %v5358_v1 = vpop.f32.mrb[105].mxu1 }
 0x489   : > { %v3859_v7 = vpop.f32.mrb[106].mxu1  ;;  %v3863_v32 = vadd.f32 %v3843_v39, %v3738_v5 }
 0x48a   : > { %v5359_v19 = vpop.f32.mrb[107].mxu1 }
 0x48c   : > { %v3723_v12 = vpop.f32.mrb[88].mxu0 }
 0x48d   : > { %v3739_v20 = vadd.f32 %v3723_v12, %v3627_v58  ;;  %v5334_v23 = vpop.f32.mrb[89].mxu0 }
 0x48e   : > { %v3726_v27 = vpop.f32.mrb[90].mxu0 }
 0x48f   : > { %v3740_v29 = vadd.f32 %v3726_v27, %v3628_v26  ;;  %v5335_v13 = vpop.f32.mrb[91].mxu0  ;;  %v4078_v30 = vpop.f32.mrb[108].mxu1  ;;  %v3864_v36 = vadd.f32 %v3848_v28, %v3739_v20 }
 0x490   : > { %v5390_v37 = vpop.f32.mrb[109].mxu1 }
 0x491   : > { %v4081_v35 = vpop.f32.mrb[110].mxu1  ;;  %v3865_v40 = vadd.f32 %v3851_v62, %v3740_v29 }
 0x492   : > { %v5391_v41 = vpop.f32.mrb[111].mxu1 }
 0x494   : > { %v3731_v42 = vpop.f32.mrb[92].mxu0 }
 0x495   : > { %v3741_v43 = vadd.f32 %v3731_v42, %v3629_v60  ;;  %v5338_v15 = vpop.f32.mrb[93].mxu0  ;;  %v4681_v60 = vld [vmem:[%s6769_s6] ss:$0 sm:$0xff] }
 0x496   : > { %v3734_v44 = vpop.f32.mrb[94].mxu0 }
 0x497   : > { %v5339_v46 = vpop.f32.mrb[95].mxu0  ;;  %v4086_v47 = vpop.f32.mrb[112].mxu1  ;;  %v3866_v49 = vadd.f32 %v3856_v10, %v3741_v43 }
 0x498   : > { %v5394_v50 = vpop.f32.mrb[113].mxu1 }
 0x499   : > { %v4089_v51 = vpop.f32.mrb[114].mxu1 }
 0x49a   : > { %v5395_v57 = vpop.f32.mrb[115].mxu1 }
 0x49c   : > { %v3953_v18 = vpop.f32.mrb[96].mxu0 }
 0x49d   : > { %v3975_v11 = vadd.f32 %v3953_v18, %v3862_v17  ;;  %v5370_v8 = vpop.f32.mrb[97].mxu0 }
 0x49e   : > { %v3956_v21 = vpop.f32.mrb[98].mxu0 }
 0x49f   : > { %v3976_v0 = vadd.f32 %v3956_v21, %v3863_v32  ;;  %v5371_v52 = vpop.f32.mrb[99].mxu0  ;;  %v4094_v53 = vpop.f32.mrb[116].mxu1  ;;  %v4100_v14 = vadd.f32 %v4078_v30, %v3975_v11 }
 0x4a0   : > { %v5398_v33 = vpop.f32.mrb[117].mxu1 }
 0x4a1   : > { %v4097_v34 = vpop.f32.mrb[118].mxu1  ;;  %v4101_v22 = vadd.f32 %v4081_v35, %v3976_v0 }
 0x4a2   : > { %v5399_v3 = vpop.f32.mrb[119].mxu1 }
 0x4a4   : > { %v3961_v31 = vpop.f32.mrb[100].mxu0 }
 0x4a5   : > { %v3977_v54 = vadd.f32 %v3961_v31, %v3864_v36  ;;  %v5374_v55 = vpop.f32.mrb[101].mxu0 }
 0x4a6   : > { %v3964_v58 = vpop.f32.mrb[102].mxu0 }
 0x4a7   : > { %v3978_v4 = vadd.f32 %v3964_v58, %v3865_v40  ;;  %v5375_v39 = vpop.f32.mrb[103].mxu0  ;;  %v4102_v26 = vadd.f32 %v4086_v47, %v3977_v54 }
 0x4a9   : > { %v4103_v38 = vadd.f32 %v4089_v51, %v3978_v4 }
 0x4ac   : > { %v3969_v9 = vpop.f32.mrb[104].mxu0 }
 0x4ad   : > { %v3979_v24 = vadd.f32 %v3969_v9, %v3866_v49  ;;  %v5378_v59 = vpop.f32.mrb[105].mxu0 }
 0x4ae   : > { %v3972_v63 = vpop.f32.mrb[106].mxu0 }
 0x4af   : > { %v5379_v56 = vpop.f32.mrb[107].mxu0  ;;  %v4104_v28 = vadd.f32 %v4094_v53, %v3979_v24 }
 0x4b4   : > { %v4197_v61 = vpop.f32.mrb[108].mxu0 }
 0x4b5   : > { %v4219_v62 = vadd.f32 %v4197_v61, %v4100_v14  ;;  %v5410_v48 = vpop.f32.mrb[109].mxu0 }
 0x4b6   : > { %v4200_v6 = vpop.f32.mrb[110].mxu0 }
 0x4b7   : > { %v4230_v45 = vadd.f32 %v4681_v60, %v4219_v62  ;;  %v4220_v25 = vadd.f32 %v4200_v6, %v4101_v22  ;;  %v5411_v16 = vpop.f32.mrb[111].mxu0 }
 0x4b9   : > { %v4235_v5 = vmax.f32 %v4230_v45, 0.0  ;;  %v4231_v2 = vadd.f32 %v4681_v60, %v4220_v25 }
 0x4bb   : > { %4240 = vst.msk [vmem:[%s283_s27] sm:$0xff] %vm323_vm13, %v4235_v5  ;;  %v4236_v10 = vmax.f32 %v4231_v2, 0.0 }
 0x4bc   : > { %v4205_v17 = vpop.f32.mrb[112].mxu0 }
 0x4bd   : > { %4241 = vst.msk [vmem:[%s283_s27 + $0x8] sm:$0xff] %vm323_vm13, %v4236_v10  ;;  %v4221_v1 = vadd.f32 %v4205_v17, %v4102_v26  ;;  %v5414_v7 = vpop.f32.mrb[113].mxu0 }
 0x4be   : > { %v4208_v32 = vpop.f32.mrb[114].mxu0 }
 0x4bf   : > { %v4232_v19 = vadd.f32 %v4681_v60, %v4221_v1  ;;  %v4222_v12 = vadd.f32 %v4208_v32, %v4103_v38  ;;  %v5415_v20 = vpop.f32.mrb[115].mxu0 }
 0x4c1   : > { %v4237_v23 = vmax.f32 %v4232_v19, 0.0  ;;  %v4233_v27 = vadd.f32 %v4681_v60, %v4222_v12 }
 0x4c3   : > { %4242 = vst.msk [vmem:[%s283_s27 + $0x10] sm:$0xff] %vm323_vm13, %v4237_v23  ;;  %v4238_v29 = vmax.f32 %v4233_v27, 0.0 }
 0x4c4   : > { %v4213_v13 = vpop.f32.mrb[116].mxu0 }
 0x4c5   : > { %4243 = vst.msk [vmem:[%s283_s27 + $0x18] sm:$0xff] %vm323_vm13, %v4238_v29  ;;  %v4223_v30 = vadd.f32 %v4213_v13, %v4104_v28  ;;  %v5418_v36 = vpop.f32.mrb[117].mxu0 }
 0x4c6   : > { %v4216_v37 = vpop.f32.mrb[118].mxu0 }
 0x4c7   : > { %v4234_v35 = vadd.f32 %v4681_v60, %v4223_v30  ;;  %v5419_v40 = vpop.f32.mrb[119].mxu0 }
 0x4c9   : > { %v4239_v41 = vmax.f32 %v4234_v35, 0.0 }
 0x4cb   : > { %4245 = vst.msk [vmem:[%s283_s27 + $0x20] sm:$0x1f] %vm4244_vm4, %v4239_v41 }
 0x4cc PF: > { %s17_s24 = sadd.s32 1, %s5631_s24  }
 0x4cd   : > { %p14_p4 = scmp.ge.s32.totalorder %s17_s24, 4  }
 0x4cf   :  { %16 = sbr.rel (!%p14_p4) target bundleno = 1 (0x1), region = 92 }

</bundles_post_ra>
